<compile_context>
chip_gen: v6e
topology: v6e:2x2x1
jax: 0.10.0
libtpu: 0.0.40
codegen_flags: <defaults>
</compile_context>

<pallas_src>
import functools

import jax
import jax.numpy as jnp
from jax import lax
from jax.experimental import pallas as pl
from jax.experimental.pallas import tpu as pltpu


# ----------------------------------------------------------------------------
# Pallas kernels
# ----------------------------------------------------------------------------
def _linear_kernel(x_ref, w_ref, b_ref, o_ref):
    """y = x @ w + b   (x: (TILE_M, K), w: (K, Nout), b: (1, Nout))."""
    o_ref[...] = (
        jnp.dot(x_ref[...], w_ref[...], preferred_element_type=jnp.float32)
        + b_ref[...]
    )


def _attention_kernel(qkv_ref, o_ref, *, num_heads, head_dim, inv_scale):
    """Per-batch attention over ALL heads.

    qkv_ref: (1, N, 3E) VMEM tile with column layout (qkv, h, d)
             -> q = cols [0, E), k = cols [E, 2E), v = cols [2E, 3E).
    o_ref:   (1, N, E)  VMEM tile, written in 'b n (h d)' layout (lane-dense
             at the HBM boundary: the last dim is the full E).
    """
    E = num_heads * head_dim
    for h in range(num_heads):          # static unroll: all heads, one grid step
        lo = h * head_dim
        qh = qkv_ref[0, :, lo:lo + head_dim]                    # (N, D)
        kh = qkv_ref[0, :, E + lo:E + lo + head_dim]            # (N, D)
        vh = qkv_ref[0, :, 2 * E + lo:2 * E + lo + head_dim]    # (N, D)

        # energy = q @ k^T without materializing k.T (contract last dims).
        energy = lax.dot_general(
            qh, kh, (((1,), (1,)), ((), ())),
            preferred_element_type=jnp.float32)                 # (N, N)

        # numerically-stable softmax along the last dim
        m = jnp.max(energy, axis=-1, keepdims=True)
        e = jnp.exp(energy - m)
        denom = jnp.sum(e, axis=-1, keepdims=True)
        # NOTE: 1/sqrt(emb_size) is applied AFTER the softmax (as in the
        # reference module); folded into the (N, 1) reciprocal so there is no
        # extra (N, N) multiply.  approx=False keeps the 1e-4 tolerance.
        att = e * (pl.reciprocal(denom, approx=False) * inv_scale)

        out_h = lax.dot_general(
            att, vh, (((1,), (0,)), ((), ())),
            preferred_element_type=jnp.float32)                 # (N, D)

        o_ref[0, :, lo:lo + head_dim] = out_h


# ----------------------------------------------------------------------------
# Wrappers calling pallas_call
# ----------------------------------------------------------------------------
def _pick_tile_m(m, preferred=256):
    """Largest sublane-aligned tile <= preferred that divides m (fallback m)."""
    cap = min(preferred, m)
    cap -= cap % 8 if cap % 8 else 0
    for t in range(max(cap, 8), 0, -8):
        if m % t == 0:
            return t
    return m


def pallas_linear(x2d, w, b, tile_m_pref=256):
    """x2d: (M, K), w: (K, Nout), b: (Nout,) -> (M, Nout), tiled over M."""
    M, K = x2d.shape
    Nout = w.shape[1]
    tm = _pick_tile_m(M, tile_m_pref)
    b2d = b.reshape(1, Nout)
    # VMEM budget note (v7x: 64 MiB phys / 32 MiB scoped): working set is
    # ~2*tm*K + K*Nout + 2*tm*Nout floats; tm=256 with K=768, Nout=2304 fits.
    cost = pl.CostEstimate(
        flops=2 * M * K * Nout + M * Nout,
        transcendentals=0,
        bytes_accessed=4 * (M * K + K * Nout + Nout + M * Nout),
    )
    return pl.pallas_call(
        _linear_kernel,
        out_shape=jax.ShapeDtypeStruct((M, Nout), jnp.float32),
        grid=(M // tm,),
        in_specs=[
            pl.BlockSpec((tm, K), lambda i: (i, 0)),
            pl.BlockSpec((K, Nout), lambda i: (0, 0)),
            pl.BlockSpec((1, Nout), lambda i: (0, 0)),
        ],
        out_specs=pl.BlockSpec((tm, Nout), lambda i: (i, 0)),
        compiler_params=pltpu.CompilerParams(
            dimension_semantics=("parallel",)),
        cost_estimate=cost,
    )(x2d, w, b2d)


def pallas_attention(qkv3d, num_heads, emb_size):
    """qkv3d: (B, N, 3E) with (qkv, h, d) column order -> (B, N, E)."""
    B, N, threeE = qkv3d.shape
    E = emb_size
    D = E // num_heads
    assert threeE == 3 * E
    inv_scale = 1.0 / (emb_size ** 0.5)
    kern = functools.partial(
        _attention_kernel, num_heads=num_heads, head_dim=D, inv_scale=inv_scale)
    cost = pl.CostEstimate(
        flops=B * num_heads * (4 * N * N * D + 4 * N * N),
        transcendentals=B * num_heads * N * N,
        bytes_accessed=4 * (B * N * 3 * E + B * N * E),
    )
    return pl.pallas_call(
        kern,
        out_shape=jax.ShapeDtypeStruct((B, N, E), jnp.float32),
        grid=(B,),
        in_specs=[pl.BlockSpec((1, N, 3 * E), lambda b: (b, 0, 0))],
        out_specs=pl.BlockSpec((1, N, E), lambda b: (b, 0, 0)),
        compiler_params=pltpu.CompilerParams(
            dimension_semantics=("parallel",)),
        cost_estimate=cost,
    )(qkv3d)


# ----------------------------------------------------------------------------
# Offline weight preparation: permute qkv columns '(h d qkv)' -> '(qkv h d)'
# ----------------------------------------------------------------------------
def prepare_params(params, num_heads, emb_size):
    E, H = emb_size, num_heads
    D = E // H
    new = jnp.arange(3 * E)
    qkv = new // E           # 0 = q, 1 = k, 2 = v  (slowest in the new layout)
    hd = new % E
    h = hd // D
    d = hd % D
    perm = h * (3 * D) + d * 3 + qkv      # old '(h d qkv)' column index
    return {
        "w_qkv": params["w_qkv"][:, perm],
        "b_qkv": params["b_qkv"][perm],
        "w_proj": params["w_proj"],
        "b_proj": params["b_proj"],
    }


# ----------------------------------------------------------------------------
# Module-equivalent forward
# ----------------------------------------------------------------------------
def multi_head_attention_forward(x, prepared_params, num_heads, emb_size):
    """x: (B, N, E) float32 -> (B, N, E) float32 (params already permuted)."""
    B, N, E = x.shape

    # --- qkv linear (q/k/v land as contiguous column blocks) ---
    x2d = x.reshape(B * N, E)
    qkv_out = pallas_linear(x2d, prepared_params["w_qkv"],
                            prepared_params["b_qkv"])           # (B*N, 3E)
    qkv3d = qkv_out.reshape(B, N, 3 * E)                        # free reshape

    # --- attention core: all heads per batch, output already 'b n (h d)' ---
    # att_drop has p=0 -> identity; mask is None -> no mask path.
    ctx = pallas_attention(qkv3d, num_heads, emb_size)          # (B, N, E)

    # --- output projection ---
    out = pallas_linear(ctx.reshape(B * N, E), prepared_params["w_proj"],
                        prepared_params["b_proj"])
    return out.reshape(B, N, E)


# ----------------------------------------------------------------------------
# Pure-JAX reference (uses the ORIGINAL, unpermuted parameters)
# ----------------------------------------------------------------------------
def reference_forward(x, params, num_heads, emb_size):
    B, N, E = x.shape
    H = num_heads
    D = E // H
    qkv_out = x @ params["w_qkv"] + params["b_qkv"]
    qkv_r = qkv_out.reshape(B, N, H, D, 3)
    q = jnp.transpose(qkv_r[..., 0], (0, 2, 1, 3))
    k = jnp.transpose(qkv_r[..., 1], (0, 2, 1, 3))
    v = jnp.transpose(qkv_r[..., 2], (0, 2, 1, 3))
    energy = jnp.einsum("bhqd,bhkd->bhqk", q, k)
    att = jax.nn.softmax(energy, axis=-1) / (emb_size ** 0.5)
    out = jnp.einsum("bhal,bhlv->bhav", att, v)
    out = jnp.transpose(out, (0, 2, 1, 3)).reshape(B, N, E)
    return out @ params["w_proj"] + params["b_proj"]


# ----------------------------------------------------------------------------
if __name__ == "__main__":
    # Small, module-consistent shapes: emb_size=64, num_heads=8 (head_dim=8),
    # batch=2, seq=16.
    emb_size, num_heads = 64, 8
    B, N = 2, 16

    key = jax.random.PRNGKey(0)
    kx, kw1, kb1, kw2, kb2 = jax.random.split(key, 5)

    x = jax.random.normal(kx, (B, N, emb_size), dtype=jnp.float32)

    # Deterministic parameter init (nn.Linear shapes, stored as (in, out)).
    params = {
        "w_qkv":  jax.random.normal(kw1, (emb_size, 3 * emb_size), jnp.float32) * 0.02,
        "b_qkv":  jax.random.normal(kb1, (3 * emb_size,), jnp.float32) * 0.02,
        "w_proj": jax.random.normal(kw2, (emb_size, emb_size), jnp.float32) * 0.02,
        "b_proj": jax.random.normal(kb2, (emb_size,), jnp.float32) * 0.02,
    }

    # One-time offline weight permutation (hoisted off the hot path).
    prepared = prepare_params(params, num_heads, emb_size)

    fwd = jax.jit(functools.partial(multi_head_attention_forward,
                                    num_heads=num_heads, emb_size=emb_size))
    out = fwd(x, prepared)
    out = jax.block_until_ready(out)

    ref = reference_forward(x, params, num_heads, emb_size)
    assert out.shape == (B, N, emb_size)
    assert jnp.allclose(out, ref, atol=1e-4, rtol=1e-4), "mismatch vs reference"

    print("KERNEL_OK")
</pallas_src>

<mosaic_0001>
module attributes {stable_mosaic.version = 11 : i64} {
  func.func @_linear_kernel(%arg0: i32, %arg1: memref<32x64xf32, #tpu.memory_space<vmem>>, %arg2: memref<64x64xf32, #tpu.memory_space<vmem>>, %arg3: memref<1x64xf32, #tpu.memory_space<vmem>>, %arg4: memref<32x64xf32, #tpu.memory_space<vmem>>) attributes {dimension_semantics = [#tpu.dimension_semantics<parallel>], iteration_bounds = array<i64: 1>, scalar_prefetch = 0 : i64, scratch_operands = 0 : i64, tpu.core_type = #tpu.core_type<tc>, window_params = [{transform_indices = @transform_0, window_bounds = array<i64: 32, 64>}, {pipeline_mode = #tpu.pipeline_mode<synchronous>, transform_indices = @transform_1, window_bounds = array<i64: 64, 64>}, {pipeline_mode = #tpu.pipeline_mode<synchronous>, transform_indices = @transform_2, window_bounds = array<i64: 1, 64>}, {transform_indices = @transform_3, window_bounds = array<i64: 32, 64>}]} {
    %c0 = arith.constant 0 : index
    %c0_0 = arith.constant 0 : index
    %0 = vector.load %arg1[%c0, %c0_0] : memref<32x64xf32, #tpu.memory_space<vmem>>, vector<32x64xf32>
    %c0_1 = arith.constant 0 : index
    %c0_2 = arith.constant 0 : index
    %1 = vector.load %arg2[%c0_1, %c0_2] : memref<64x64xf32, #tpu.memory_space<vmem>>, vector<64x64xf32>
    %cst = arith.constant dense<0.000000e+00> : vector<32x64xf32>
    %2 = tpu.matmul %0, %1, %cst {dimension_numbers = #tpu.dot_dimension_numbers<[1], [0], [0], [1], [0, 0, 1, 1], [], []>} : vector<32x64xf32>, vector<64x64xf32>, vector<32x64xf32> -> vector<32x64xf32>
    %c0_3 = arith.constant 0 : index
    %c0_4 = arith.constant 0 : index
    %3 = vector.load %arg3[%c0_3, %c0_4] : memref<1x64xf32, #tpu.memory_space<vmem>>, vector<1x64xf32>
    %4 = vector.broadcast %3 : vector<1x64xf32> to vector<32x64xf32>
    %5 = arith.addf %2, %4 : vector<32x64xf32>
    %c0_5 = arith.constant 0 : index
    %c0_6 = arith.constant 0 : index
    %6 = vector.load %arg4[%c0_5, %c0_6] : memref<32x64xf32, #tpu.memory_space<vmem>>, vector<32x64xf32>
    tpu.vector_store %arg4[%c0_5, %c0_6], %5 {strides = array<i32>} : memref<32x64xf32, #tpu.memory_space<vmem>>, vector<32x64xf32>,
    return
  }
  func.func @transform_0(%arg0: i32) -> (i32, i32) {
    %c0_i32 = arith.constant 0 : i32
    %c0_i32_0 = arith.constant 0 : i32
    return %arg0, %c0_i32 : i32, i32
  }
  func.func @transform_1(%arg0: i32) -> (i32, i32) {
    %c0_i32 = arith.constant 0 : i32
    %c0_i32_0 = arith.constant 0 : i32
    %c0_i32_1 = arith.constant 0 : i32
    return %c0_i32, %c0_i32_0 : i32, i32
  }
  func.func @transform_2(%arg0: i32) -> (i32, i32) {
    %c0_i32 = arith.constant 0 : i32
    %c0_i32_0 = arith.constant 0 : i32
    %c0_i32_1 = arith.constant 0 : i32
    return %c0_i32, %c0_i32_0 : i32, i32
  }
  func.func @transform_3(%arg0: i32) -> (i32, i32) {
    %c0_i32 = arith.constant 0 : i32
    %c0_i32_0 = arith.constant 0 : i32
    return %arg0, %c0_i32 : i32, i32
  }
}

module attributes {stable_mosaic.version = 11 : i64} {
  func.func @_linear_kernel(%arg0: i32, %arg1: memref<32x64xf32, #tpu.memory_space<vmem>>, %arg2: memref<64x192xf32, #tpu.memory_space<vmem>>, %arg3: memref<1x192xf32, #tpu.memory_space<vmem>>, %arg4: memref<32x192xf32, #tpu.memory_space<vmem>>) attributes {dimension_semantics = [#tpu.dimension_semantics<parallel>], iteration_bounds = array<i64: 1>, scalar_prefetch = 0 : i64, scratch_operands = 0 : i64, tpu.core_type = #tpu.core_type<tc>, window_params = [{transform_indices = @transform_0, window_bounds = array<i64: 32, 64>}, {pipeline_mode = #tpu.pipeline_mode<synchronous>, transform_indices = @transform_1, window_bounds = array<i64: 64, 192>}, {pipeline_mode = #tpu.pipeline_mode<synchronous>, transform_indices = @transform_2, window_bounds = array<i64: 1, 192>}, {transform_indices = @transform_3, window_bounds = array<i64: 32, 192>}]} {
    %c0 = arith.constant 0 : index
    %c0_0 = arith.constant 0 : index
    %0 = vector.load %arg1[%c0, %c0_0] : memref<32x64xf32, #tpu.memory_space<vmem>>, vector<32x64xf32>
    %c0_1 = arith.constant 0 : index
    %c0_2 = arith.constant 0 : index
    %1 = vector.load %arg2[%c0_1, %c0_2] : memref<64x192xf32, #tpu.memory_space<vmem>>, vector<64x192xf32>
    %cst = arith.constant dense<0.000000e+00> : vector<32x192xf32>
    %2 = tpu.matmul %0, %1, %cst {dimension_numbers = #tpu.dot_dimension_numbers<[1], [0], [0], [1], [0, 0, 1, 1], [], []>} : vector<32x64xf32>, vector<64x192xf32>, vector<32x192xf32> -> vector<32x192xf32>
    %c0_3 = arith.constant 0 : index
    %c0_4 = arith.constant 0 : index
    %3 = vector.load %arg3[%c0_3, %c0_4] : memref<1x192xf32, #tpu.memory_space<vmem>>, vector<1x192xf32>
    %4 = vector.broadcast %3 : vector<1x192xf32> to vector<32x192xf32>
    %5 = arith.addf %2, %4 : vector<32x192xf32>
    %c0_5 = arith.constant 0 : index
    %c0_6 = arith.constant 0 : index
    %6 = vector.load %arg4[%c0_5, %c0_6] : memref<32x192xf32, #tpu.memory_space<vmem>>, vector<32x192xf32>
    tpu.vector_store %arg4[%c0_5, %c0_6], %5 {strides = array<i32>} : memref<32x192xf32, #tpu.memory_space<vmem>>, vector<32x192xf32>,
    return
  }
  func.func @transform_0(%arg0: i32) -> (i32, i32) {
    %c0_i32 = arith.constant 0 : i32
    %c0_i32_0 = arith.constant 0 : i32
    return %arg0, %c0_i32 : i32, i32
  }
  func.func @transform_1(%arg0: i32) -> (i32, i32) {
    %c0_i32 = arith.constant 0 : i32
    %c0_i32_0 = arith.constant 0 : i32
    %c0_i32_1 = arith.constant 0 : i32
    return %c0_i32, %c0_i32_0 : i32, i32
  }
  func.func @transform_2(%arg0: i32) -> (i32, i32) {
    %c0_i32 = arith.constant 0 : i32
    %c0_i32_0 = arith.constant 0 : i32
    %c0_i32_1 = arith.constant 0 : i32
    return %c0_i32, %c0_i32_0 : i32, i32
  }
  func.func @transform_3(%arg0: i32) -> (i32, i32) {
    %c0_i32 = arith.constant 0 : i32
    %c0_i32_0 = arith.constant 0 : i32
    return %arg0, %c0_i32 : i32, i32
  }
}

module attributes {stable_mosaic.version = 11 : i64} {
  func.func @_attention_kernel(%arg0: i32, %arg1: memref<1x16x192xf32, #tpu.memory_space<vmem>>, %arg2: memref<1x16x64xf32, #tpu.memory_space<vmem>>) attributes {dimension_semantics = [#tpu.dimension_semantics<parallel>], iteration_bounds = array<i64: 2>, scalar_prefetch = 0 : i64, scratch_operands = 0 : i64, tpu.core_type = #tpu.core_type<tc>, window_params = [{transform_indices = @transform_0, window_bounds = array<i64: 1, 16, 192>}, {transform_indices = @transform_1, window_bounds = array<i64: 1, 16, 64>}]} {
    %c0 = arith.constant 0 : index
    %c0_0 = arith.constant 0 : index
    %c0_1 = arith.constant 0 : index
    %0 = vector.load %arg1[%c0, %c0_0, %c0_1] : memref<1x16x192xf32, #tpu.memory_space<vmem>>, vector<1x16x8xf32>
    %1 = vector.shape_cast %0 : vector<1x16x8xf32> to vector<16x8xf32>
    %c0_2 = arith.constant 0 : index
    %c0_3 = arith.constant 0 : index
    %c64 = arith.constant 64 : index
    %2 = vector.load %arg1[%c0_2, %c0_3, %c64] : memref<1x16x192xf32, #tpu.memory_space<vmem>>, vector<1x16x8xf32>
    %3 = vector.shape_cast %2 : vector<1x16x8xf32> to vector<16x8xf32>
    %c0_4 = arith.constant 0 : index
    %c0_5 = arith.constant 0 : index
    %c128 = arith.constant 128 : index
    %4 = vector.load %arg1[%c0_4, %c0_5, %c128] : memref<1x16x192xf32, #tpu.memory_space<vmem>>, vector<1x16x8xf32>
    %5 = vector.shape_cast %4 : vector<1x16x8xf32> to vector<16x8xf32>
    %cst = arith.constant dense<0.000000e+00> : vector<16x16xf32>
    %6 = tpu.matmul %1, %3, %cst {dimension_numbers = #tpu.dot_dimension_numbers<[1], [1], [0], [0], [0, 0, 1, 0], [], []>} : vector<16x8xf32>, vector<16x8xf32>, vector<16x16xf32> -> vector<16x16xf32>
    %cst_6 = arith.constant dense<0xFF800000> : vector<16xf32>
    %7 = vector.multi_reduction <maximumf>, %6, %cst_6 [1] : vector<16x16xf32> to vector<16xf32>
    %8 = vector.shape_cast %7 : vector<16xf32> to vector<16x1xf32>
    %9 = vector.broadcast %8 : vector<16x1xf32> to vector<16x16xf32>
    %10 = arith.subf %6, %9 : vector<16x16xf32>
    %11 = math.exp %10 : vector<16x16xf32>
    %cst_7 = arith.constant dense<0.000000e+00> : vector<16xf32>
    %12 = vector.multi_reduction <add>, %11, %cst_7 [1] : vector<16x16xf32> to vector<16xf32>
    %13 = vector.shape_cast %12 : vector<16xf32> to vector<16x1xf32>
    %14 = tpu.reciprocal %13 : vector<16x1xf32> -> vector<16x1xf32>
    %cst_8 = arith.constant 1.250000e-01 : f32
    %15 = vector.broadcast %cst_8 : f32 to vector<16x1xf32>
    %16 = arith.mulf %14, %15 : vector<16x1xf32>
    %17 = vector.broadcast %16 : vector<16x1xf32> to vector<16x16xf32>
    %18 = arith.mulf %11, %17 : vector<16x16xf32>
    %cst_9 = arith.constant dense<0.000000e+00> : vector<16x8xf32>
    %19 = tpu.matmul %18, %5, %cst_9 {dimension_numbers = #tpu.dot_dimension_numbers<[1], [0], [0], [1], [0, 0, 1, 1], [], []>} : vector<16x16xf32>, vector<16x8xf32>, vector<16x8xf32> -> vector<16x8xf32>
    %c0_10 = arith.constant 0 : index
    %c0_11 = arith.constant 0 : index
    %c0_12 = arith.constant 0 : index
    %20 = vector.load %arg2[%c0_10, %c0_11, %c0_12] : memref<1x16x64xf32, #tpu.memory_space<vmem>>, vector<1x16x8xf32>
    %21 = vector.shape_cast %20 : vector<1x16x8xf32> to vector<16x8xf32>
    %22 = vector.shape_cast %19 : vector<16x8xf32> to vector<1x16x8xf32>
    tpu.vector_store %arg2[%c0_10, %c0_11, %c0_12], %22 {strides = array<i32>} : memref<1x16x64xf32, #tpu.memory_space<vmem>>, vector<1x16x8xf32>,
    %c0_13 = arith.constant 0 : index
    %c0_14 = arith.constant 0 : index
    %c8 = arith.constant 8 : index
    %23 = vector.load %arg1[%c0_13, %c0_14, %c8] : memref<1x16x192xf32, #tpu.memory_space<vmem>>, vector<1x16x8xf32>
    %24 = vector.shape_cast %23 : vector<1x16x8xf32> to vector<16x8xf32>
    %c0_15 = arith.constant 0 : index
    %c0_16 = arith.constant 0 : index
    %c72 = arith.constant 72 : index
    %25 = vector.load %arg1[%c0_15, %c0_16, %c72] : memref<1x16x192xf32, #tpu.memory_space<vmem>>, vector<1x16x8xf32>
    %26 = vector.shape_cast %25 : vector<1x16x8xf32> to vector<16x8xf32>
    %c0_17 = arith.constant 0 : index
    %c0_18 = arith.constant 0 : index
    %c136 = arith.constant 136 : index
    %27 = vector.load %arg1[%c0_17, %c0_18, %c136] : memref<1x16x192xf32, #tpu.memory_space<vmem>>, vector<1x16x8xf32>
    %28 = vector.shape_cast %27 : vector<1x16x8xf32> to vector<16x8xf32>
    %cst_19 = arith.constant dense<0.000000e+00> : vector<16x16xf32>
    %29 = tpu.matmul %24, %26, %cst_19 {dimension_numbers = #tpu.dot_dimension_numbers<[1], [1], [0], [0], [0, 0, 1, 0], [], []>} : vector<16x8xf32>, vector<16x8xf32>, vector<16x16xf32> -> vector<16x16xf32>
    %cst_20 = arith.constant dense<0xFF800000> : vector<16xf32>
    %30 = vector.multi_reduction <maximumf>, %29, %cst_20 [1] : vector<16x16xf32> to vector<16xf32>
    %31 = vector.shape_cast %30 : vector<16xf32> to vector<16x1xf32>
    %32 = vector.broadcast %31 : vector<16x1xf32> to vector<16x16xf32>
    %33 = arith.subf %29, %32 : vector<16x16xf32>
    %34 = math.exp %33 : vector<16x16xf32>
    %cst_21 = arith.constant dense<0.000000e+00> : vector<16xf32>
    %35 = vector.multi_reduction <add>, %34, %cst_21 [1] : vector<16x16xf32> to vector<16xf32>
    %36 = vector.shape_cast %35 : vector<16xf32> to vector<16x1xf32>
    %37 = tpu.reciprocal %36 : vector<16x1xf32> -> vector<16x1xf32>
    %cst_22 = arith.constant 1.250000e-01 : f32
    %38 = vector.broadcast %cst_22 : f32 to vector<16x1xf32>
    %39 = arith.mulf %37, %38 : vector<16x1xf32>
    %40 = vector.broadcast %39 : vector<16x1xf32> to vector<16x16xf32>
    %41 = arith.mulf %34, %40 : vector<16x16xf32>
    %cst_23 = arith.constant dense<0.000000e+00> : vector<16x8xf32>
    %42 = tpu.matmul %41, %28, %cst_23 {dimension_numbers = #tpu.dot_dimension_numbers<[1], [0], [0], [1], [0, 0, 1, 1], [], []>} : vector<16x16xf32>, vector<16x8xf32>, vector<16x8xf32> -> vector<16x8xf32>
    %c0_24 = arith.constant 0 : index
    %c0_25 = arith.constant 0 : index
    %c8_26 = arith.constant 8 : index
    %43 = vector.load %arg2[%c0_24, %c0_25, %c8_26] : memref<1x16x64xf32, #tpu.memory_space<vmem>>, vector<1x16x8xf32>
    %44 = vector.shape_cast %43 : vector<1x16x8xf32> to vector<16x8xf32>
    %45 = vector.shape_cast %42 : vector<16x8xf32> to vector<1x16x8xf32>
    tpu.vector_store %arg2[%c0_24, %c0_25, %c8_26], %45 {strides = array<i32>} : memref<1x16x64xf32, #tpu.memory_space<vmem>>, vector<1x16x8xf32>,
    %c0_27 = arith.constant 0 : index
    %c0_28 = arith.constant 0 : index
    %c16 = arith.constant 16 : index
    %46 = vector.load %arg1[%c0_27, %c0_28, %c16] : memref<1x16x192xf32, #tpu.memory_space<vmem>>, vector<1x16x8xf32>
    %47 = vector.shape_cast %46 : vector<1x16x8xf32> to vector<16x8xf32>
    %c0_29 = arith.constant 0 : index
    %c0_30 = arith.constant 0 : index
    %c80 = arith.constant 80 : index
    %48 = vector.load %arg1[%c0_29, %c0_30, %c80] : memref<1x16x192xf32, #tpu.memory_space<vmem>>, vector<1x16x8xf32>
    %49 = vector.shape_cast %48 : vector<1x16x8xf32> to vector<16x8xf32>
    %c0_31 = arith.constant 0 : index
    %c0_32 = arith.constant 0 : index
    %c144 = arith.constant 144 : index
    %50 = vector.load %arg1[%c0_31, %c0_32, %c144] : memref<1x16x192xf32, #tpu.memory_space<vmem>>, vector<1x16x8xf32>
    %51 = vector.shape_cast %50 : vector<1x16x8xf32> to vector<16x8xf32>
    %cst_33 = arith.constant dense<0.000000e+00> : vector<16x16xf32>
    %52 = tpu.matmul %47, %49, %cst_33 {dimension_numbers = #tpu.dot_dimension_numbers<[1], [1], [0], [0], [0, 0, 1, 0], [], []>} : vector<16x8xf32>, vector<16x8xf32>, vector<16x16xf32> -> vector<16x16xf32>
    %cst_34 = arith.constant dense<0xFF800000> : vector<16xf32>
    %53 = vector.multi_reduction <maximumf>, %52, %cst_34 [1] : vector<16x16xf32> to vector<16xf32>
    %54 = vector.shape_cast %53 : vector<16xf32> to vector<16x1xf32>
    %55 = vector.broadcast %54 : vector<16x1xf32> to vector<16x16xf32>
    %56 = arith.subf %52, %55 : vector<16x16xf32>
    %57 = math.exp %56 : vector<16x16xf32>
    %cst_35 = arith.constant dense<0.000000e+00> : vector<16xf32>
    %58 = vector.multi_reduction <add>, %57, %cst_35 [1] : vector<16x16xf32> to vector<16xf32>
    %59 = vector.shape_cast %58 : vector<16xf32> to vector<16x1xf32>
    %60 = tpu.reciprocal %59 : vector<16x1xf32> -> vector<16x1xf32>
    %cst_36 = arith.constant 1.250000e-01 : f32
    %61 = vector.broadcast %cst_36 : f32 to vector<16x1xf32>
    %62 = arith.mulf %60, %61 : vector<16x1xf32>
    %63 = vector.broadcast %62 : vector<16x1xf32> to vector<16x16xf32>
    %64 = arith.mulf %57, %63 : vector<16x16xf32>
    %cst_37 = arith.constant dense<0.000000e+00> : vector<16x8xf32>
    %65 = tpu.matmul %64, %51, %cst_37 {dimension_numbers = #tpu.dot_dimension_numbers<[1], [0], [0], [1], [0, 0, 1, 1], [], []>} : vector<16x16xf32>, vector<16x8xf32>, vector<16x8xf32> -> vector<16x8xf32>
    %c0_38 = arith.constant 0 : index
    %c0_39 = arith.constant 0 : index
    %c16_40 = arith.constant 16 : index
    %66 = vector.load %arg2[%c0_38, %c0_39, %c16_40] : memref<1x16x64xf32, #tpu.memory_space<vmem>>, vector<1x16x8xf32>
    %67 = vector.shape_cast %66 : vector<1x16x8xf32> to vector<16x8xf32>
    %68 = vector.shape_cast %65 : vector<16x8xf32> to vector<1x16x8xf32>
    tpu.vector_store %arg2[%c0_38, %c0_39, %c16_40], %68 {strides = array<i32>} : memref<1x16x64xf32, #tpu.memory_space<vmem>>, vector<1x16x8xf32>,
    %c0_41 = arith.constant 0 : index
    %c0_42 = arith.constant 0 : index
    %c24 = arith.constant 24 : index
    %69 = vector.load %arg1[%c0_41, %c0_42, %c24] : memref<1x16x192xf32, #tpu.memory_space<vmem>>, vector<1x16x8xf32>
    %70 = vector.shape_cast %69 : vector<1x16x8xf32> to vector<16x8xf32>
    %c0_43 = arith.constant 0 : index
    %c0_44 = arith.constant 0 : index
    %c88 = arith.constant 88 : index
    %71 = vector.load %arg1[%c0_43, %c0_44, %c88] : memref<1x16x192xf32, #tpu.memory_space<vmem>>, vector<1x16x8xf32>
    %72 = vector.shape_cast %71 : vector<1x16x8xf32> to vector<16x8xf32>
    %c0_45 = arith.constant 0 : index
    %c0_46 = arith.constant 0 : index
    %c152 = arith.constant 152 : index
    %73 = vector.load %arg1[%c0_45, %c0_46, %c152] : memref<1x16x192xf32, #tpu.memory_space<vmem>>, vector<1x16x8xf32>
    %74 = vector.shape_cast %73 : vector<1x16x8xf32> to vector<16x8xf32>
    %cst_47 = arith.constant dense<0.000000e+00> : vector<16x16xf32>
    %75 = tpu.matmul %70, %72, %cst_47 {dimension_numbers = #tpu.dot_dimension_numbers<[1], [1], [0], [0], [0, 0, 1, 0], [], []>} : vector<16x8xf32>, vector<16x8xf32>, vector<16x16xf32> -> vector<16x16xf32>
    %cst_48 = arith.constant dense<0xFF800000> : vector<16xf32>
    %76 = vector.multi_reduction <maximumf>, %75, %cst_48 [1] : vector<16x16xf32> to vector<16xf32>
    %77 = vector.shape_cast %76 : vector<16xf32> to vector<16x1xf32>
    %78 = vector.broadcast %77 : vector<16x1xf32> to vector<16x16xf32>
    %79 = arith.subf %75, %78 : vector<16x16xf32>
    %80 = math.exp %79 : vector<16x16xf32>
    %cst_49 = arith.constant dense<0.000000e+00> : vector<16xf32>
    %81 = vector.multi_reduction <add>, %80, %cst_49 [1] : vector<16x16xf32> to vector<16xf32>
    %82 = vector.shape_cast %81 : vector<16xf32> to vector<16x1xf32>
    %83 = tpu.reciprocal %82 : vector<16x1xf32> -> vector<16x1xf32>
    %cst_50 = arith.constant 1.250000e-01 : f32
    %84 = vector.broadcast %cst_50 : f32 to vector<16x1xf32>
    %85 = arith.mulf %83, %84 : vector<16x1xf32>
    %86 = vector.broadcast %85 : vector<16x1xf32> to vector<16x16xf32>
    %87 = arith.mulf %80, %86 : vector<16x16xf32>
    %cst_51 = arith.constant dense<0.000000e+00> : vector<16x8xf32>
    %88 = tpu.matmul %87, %74, %cst_51 {dimension_numbers = #tpu.dot_dimension_numbers<[1], [0], [0], [1], [0, 0, 1, 1], [], []>} : vector<16x16xf32>, vector<16x8xf32>, vector<16x8xf32> -> vector<16x8xf32>
    %c0_52 = arith.constant 0 : index
    %c0_53 = arith.constant 0 : index
    %c24_54 = arith.constant 24 : index
    %89 = vector.load %arg2[%c0_52, %c0_53, %c24_54] : memref<1x16x64xf32, #tpu.memory_space<vmem>>, vector<1x16x8xf32>
    %90 = vector.shape_cast %89 : vector<1x16x8xf32> to vector<16x8xf32>
    %91 = vector.shape_cast %88 : vector<16x8xf32> to vector<1x16x8xf32>
    tpu.vector_store %arg2[%c0_52, %c0_53, %c24_54], %91 {strides = array<i32>} : memref<1x16x64xf32, #tpu.memory_space<vmem>>, vector<1x16x8xf32>,
    %c0_55 = arith.constant 0 : index
    %c0_56 = arith.constant 0 : index
    %c32 = arith.constant 32 : index
    %92 = vector.load %arg1[%c0_55, %c0_56, %c32] : memref<1x16x192xf32, #tpu.memory_space<vmem>>, vector<1x16x8xf32>
    %93 = vector.shape_cast %92 : vector<1x16x8xf32> to vector<16x8xf32>
    %c0_57 = arith.constant 0 : index
    %c0_58 = arith.constant 0 : index
    %c96 = arith.constant 96 : index
    %94 = vector.load %arg1[%c0_57, %c0_58, %c96] : memref<1x16x192xf32, #tpu.memory_space<vmem>>, vector<1x16x8xf32>
    %95 = vector.shape_cast %94 : vector<1x16x8xf32> to vector<16x8xf32>
    %c0_59 = arith.constant 0 : index
    %c0_60 = arith.constant 0 : index
    %c160 = arith.constant 160 : index
    %96 = vector.load %arg1[%c0_59, %c0_60, %c160] : memref<1x16x192xf32, #tpu.memory_space<vmem>>, vector<1x16x8xf32>
    %97 = vector.shape_cast %96 : vector<1x16x8xf32> to vector<16x8xf32>
    %cst_61 = arith.constant dense<0.000000e+00> : vector<16x16xf32>
    %98 = tpu.matmul %93, %95, %cst_61 {dimension_numbers = #tpu.dot_dimension_numbers<[1], [1], [0], [0], [0, 0, 1, 0], [], []>} : vector<16x8xf32>, vector<16x8xf32>, vector<16x16xf32> -> vector<16x16xf32>
    %cst_62 = arith.constant dense<0xFF800000> : vector<16xf32>
    %99 = vector.multi_reduction <maximumf>, %98, %cst_62 [1] : vector<16x16xf32> to vector<16xf32>
    %100 = vector.shape_cast %99 : vector<16xf32> to vector<16x1xf32>
    %101 = vector.broadcast %100 : vector<16x1xf32> to vector<16x16xf32>
    %102 = arith.subf %98, %101 : vector<16x16xf32>
    %103 = math.exp %102 : vector<16x16xf32>
    %cst_63 = arith.constant dense<0.000000e+00> : vector<16xf32>
    %104 = vector.multi_reduction <add>, %103, %cst_63 [1] : vector<16x16xf32> to vector<16xf32>
    %105 = vector.shape_cast %104 : vector<16xf32> to vector<16x1xf32>
    %106 = tpu.reciprocal %105 : vector<16x1xf32> -> vector<16x1xf32>
    %cst_64 = arith.constant 1.250000e-01 : f32
    %107 = vector.broadcast %cst_64 : f32 to vector<16x1xf32>
    %108 = arith.mulf %106, %107 : vector<16x1xf32>
    %109 = vector.broadcast %108 : vector<16x1xf32> to vector<16x16xf32>
    %110 = arith.mulf %103, %109 : vector<16x16xf32>
    %cst_65 = arith.constant dense<0.000000e+00> : vector<16x8xf32>
    %111 = tpu.matmul %110, %97, %cst_65 {dimension_numbers = #tpu.dot_dimension_numbers<[1], [0], [0], [1], [0, 0, 1, 1], [], []>} : vector<16x16xf32>, vector<16x8xf32>, vector<16x8xf32> -> vector<16x8xf32>
    %c0_66 = arith.constant 0 : index
    %c0_67 = arith.constant 0 : index
    %c32_68 = arith.constant 32 : index
    %112 = vector.load %arg2[%c0_66, %c0_67, %c32_68] : memref<1x16x64xf32, #tpu.memory_space<vmem>>, vector<1x16x8xf32>
    %113 = vector.shape_cast %112 : vector<1x16x8xf32> to vector<16x8xf32>
    %114 = vector.shape_cast %111 : vector<16x8xf32> to vector<1x16x8xf32>
    tpu.vector_store %arg2[%c0_66, %c0_67, %c32_68], %114 {strides = array<i32>} : memref<1x16x64xf32, #tpu.memory_space<vmem>>, vector<1x16x8xf32>,
    %c0_69 = arith.constant 0 : index
    %c0_70 = arith.constant 0 : index
    %c40 = arith.constant 40 : index
    %115 = vector.load %arg1[%c0_69, %c0_70, %c40] : memref<1x16x192xf32, #tpu.memory_space<vmem>>, vector<1x16x8xf32>
    %116 = vector.shape_cast %115 : vector<1x16x8xf32> to vector<16x8xf32>
    %c0_71 = arith.constant 0 : index
    %c0_72 = arith.constant 0 : index
    %c104 = arith.constant 104 : index
    %117 = vector.load %arg1[%c0_71, %c0_72, %c104] : memref<1x16x192xf32, #tpu.memory_space<vmem>>, vector<1x16x8xf32>
    %118 = vector.shape_cast %117 : vector<1x16x8xf32> to vector<16x8xf32>
    %c0_73 = arith.constant 0 : index
    %c0_74 = arith.constant 0 : index
    %c168 = arith.constant 168 : index
    %119 = vector.load %arg1[%c0_73, %c0_74, %c168] : memref<1x16x192xf32, #tpu.memory_space<vmem>>, vector<1x16x8xf32>
    %120 = vector.shape_cast %119 : vector<1x16x8xf32> to vector<16x8xf32>
    %cst_75 = arith.constant dense<0.000000e+00> : vector<16x16xf32>
    %121 = tpu.matmul %116, %118, %cst_75 {dimension_numbers = #tpu.dot_dimension_numbers<[1], [1], [0], [0], [0, 0, 1, 0], [], []>} : vector<16x8xf32>, vector<16x8xf32>, vector<16x16xf32> -> vector<16x16xf32>
    %cst_76 = arith.constant dense<0xFF800000> : vector<16xf32>
    %122 = vector.multi_reduction <maximumf>, %121, %cst_76 [1] : vector<16x16xf32> to vector<16xf32>
    %123 = vector.shape_cast %122 : vector<16xf32> to vector<16x1xf32>
    %124 = vector.broadcast %123 : vector<16x1xf32> to vector<16x16xf32>
    %125 = arith.subf %121, %124 : vector<16x16xf32>
    %126 = math.exp %125 : vector<16x16xf32>
    %cst_77 = arith.constant dense<0.000000e+00> : vector<16xf32>
    %127 = vector.multi_reduction <add>, %126, %cst_77 [1] : vector<16x16xf32> to vector<16xf32>
    %128 = vector.shape_cast %127 : vector<16xf32> to vector<16x1xf32>
    %129 = tpu.reciprocal %128 : vector<16x1xf32> -> vector<16x1xf32>
    %cst_78 = arith.constant 1.250000e-01 : f32
    %130 = vector.broadcast %cst_78 : f32 to vector<16x1xf32>
    %131 = arith.mulf %129, %130 : vector<16x1xf32>
    %132 = vector.broadcast %131 : vector<16x1xf32> to vector<16x16xf32>
    %133 = arith.mulf %126, %132 : vector<16x16xf32>
    %cst_79 = arith.constant dense<0.000000e+00> : vector<16x8xf32>
    %134 = tpu.matmul %133, %120, %cst_79 {dimension_numbers = #tpu.dot_dimension_numbers<[1], [0], [0], [1], [0, 0, 1, 1], [], []>} : vector<16x16xf32>, vector<16x8xf32>, vector<16x8xf32> -> vector<16x8xf32>
    %c0_80 = arith.constant 0 : index
    %c0_81 = arith.constant 0 : index
    %c40_82 = arith.constant 40 : index
    %135 = vector.load %arg2[%c0_80, %c0_81, %c40_82] : memref<1x16x64xf32, #tpu.memory_space<vmem>>, vector<1x16x8xf32>
    %136 = vector.shape_cast %135 : vector<1x16x8xf32> to vector<16x8xf32>
    %137 = vector.shape_cast %134 : vector<16x8xf32> to vector<1x16x8xf32>
    tpu.vector_store %arg2[%c0_80, %c0_81, %c40_82], %137 {strides = array<i32>} : memref<1x16x64xf32, #tpu.memory_space<vmem>>, vector<1x16x8xf32>,
    %c0_83 = arith.constant 0 : index
    %c0_84 = arith.constant 0 : index
    %c48 = arith.constant 48 : index
    %138 = vector.load %arg1[%c0_83, %c0_84, %c48] : memref<1x16x192xf32, #tpu.memory_space<vmem>>, vector<1x16x8xf32>
    %139 = vector.shape_cast %138 : vector<1x16x8xf32> to vector<16x8xf32>
    %c0_85 = arith.constant 0 : index
    %c0_86 = arith.constant 0 : index
    %c112 = arith.constant 112 : index
    %140 = vector.load %arg1[%c0_85, %c0_86, %c112] : memref<1x16x192xf32, #tpu.memory_space<vmem>>, vector<1x16x8xf32>
    %141 = vector.shape_cast %140 : vector<1x16x8xf32> to vector<16x8xf32>
    %c0_87 = arith.constant 0 : index
    %c0_88 = arith.constant 0 : index
    %c176 = arith.constant 176 : index
    %142 = vector.load %arg1[%c0_87, %c0_88, %c176] : memref<1x16x192xf32, #tpu.memory_space<vmem>>, vector<1x16x8xf32>
    %143 = vector.shape_cast %142 : vector<1x16x8xf32> to vector<16x8xf32>
    %cst_89 = arith.constant dense<0.000000e+00> : vector<16x16xf32>
    %144 = tpu.matmul %139, %141, %cst_89 {dimension_numbers = #tpu.dot_dimension_numbers<[1], [1], [0], [0], [0, 0, 1, 0], [], []>} : vector<16x8xf32>, vector<16x8xf32>, vector<16x16xf32> -> vector<16x16xf32>
    %cst_90 = arith.constant dense<0xFF800000> : vector<16xf32>
    %145 = vector.multi_reduction <maximumf>, %144, %cst_90 [1] : vector<16x16xf32> to vector<16xf32>
    %146 = vector.shape_cast %145 : vector<16xf32> to vector<16x1xf32>
    %147 = vector.broadcast %146 : vector<16x1xf32> to vector<16x16xf32>
    %148 = arith.subf %144, %147 : vector<16x16xf32>
    %149 = math.exp %148 : vector<16x16xf32>
    %cst_91 = arith.constant dense<0.000000e+00> : vector<16xf32>
    %150 = vector.multi_reduction <add>, %149, %cst_91 [1] : vector<16x16xf32> to vector<16xf32>
    %151 = vector.shape_cast %150 : vector<16xf32> to vector<16x1xf32>
    %152 = tpu.reciprocal %151 : vector<16x1xf32> -> vector<16x1xf32>
    %cst_92 = arith.constant 1.250000e-01 : f32
    %153 = vector.broadcast %cst_92 : f32 to vector<16x1xf32>
    %154 = arith.mulf %152, %153 : vector<16x1xf32>
    %155 = vector.broadcast %154 : vector<16x1xf32> to vector<16x16xf32>
    %156 = arith.mulf %149, %155 : vector<16x16xf32>
    %cst_93 = arith.constant dense<0.000000e+00> : vector<16x8xf32>
    %157 = tpu.matmul %156, %143, %cst_93 {dimension_numbers = #tpu.dot_dimension_numbers<[1], [0], [0], [1], [0, 0, 1, 1], [], []>} : vector<16x16xf32>, vector<16x8xf32>, vector<16x8xf32> -> vector<16x8xf32>
    %c0_94 = arith.constant 0 : index
    %c0_95 = arith.constant 0 : index
    %c48_96 = arith.constant 48 : index
    %158 = vector.load %arg2[%c0_94, %c0_95, %c48_96] : memref<1x16x64xf32, #tpu.memory_space<vmem>>, vector<1x16x8xf32>
    %159 = vector.shape_cast %158 : vector<1x16x8xf32> to vector<16x8xf32>
    %160 = vector.shape_cast %157 : vector<16x8xf32> to vector<1x16x8xf32>
    tpu.vector_store %arg2[%c0_94, %c0_95, %c48_96], %160 {strides = array<i32>} : memref<1x16x64xf32, #tpu.memory_space<vmem>>, vector<1x16x8xf32>,
    %c0_97 = arith.constant 0 : index
    %c0_98 = arith.constant 0 : index
    %c56 = arith.constant 56 : index
    %161 = vector.load %arg1[%c0_97, %c0_98, %c56] : memref<1x16x192xf32, #tpu.memory_space<vmem>>, vector<1x16x8xf32>
    %162 = vector.shape_cast %161 : vector<1x16x8xf32> to vector<16x8xf32>
    %c0_99 = arith.constant 0 : index
    %c0_100 = arith.constant 0 : index
    %c120 = arith.constant 120 : index
    %163 = vector.load %arg1[%c0_99, %c0_100, %c120] : memref<1x16x192xf32, #tpu.memory_space<vmem>>, vector<1x16x8xf32>
    %164 = vector.shape_cast %163 : vector<1x16x8xf32> to vector<16x8xf32>
    %c0_101 = arith.constant 0 : index
    %c0_102 = arith.constant 0 : index
    %c184 = arith.constant 184 : index
    %165 = vector.load %arg1[%c0_101, %c0_102, %c184] : memref<1x16x192xf32, #tpu.memory_space<vmem>>, vector<1x16x8xf32>
    %166 = vector.shape_cast %165 : vector<1x16x8xf32> to vector<16x8xf32>
    %cst_103 = arith.constant dense<0.000000e+00> : vector<16x16xf32>
    %167 = tpu.matmul %162, %164, %cst_103 {dimension_numbers = #tpu.dot_dimension_numbers<[1], [1], [0], [0], [0, 0, 1, 0], [], []>} : vector<16x8xf32>, vector<16x8xf32>, vector<16x16xf32> -> vector<16x16xf32>
    %cst_104 = arith.constant dense<0xFF800000> : vector<16xf32>
    %168 = vector.multi_reduction <maximumf>, %167, %cst_104 [1] : vector<16x16xf32> to vector<16xf32>
    %169 = vector.shape_cast %168 : vector<16xf32> to vector<16x1xf32>
    %170 = vector.broadcast %169 : vector<16x1xf32> to vector<16x16xf32>
    %171 = arith.subf %167, %170 : vector<16x16xf32>
    %172 = math.exp %171 : vector<16x16xf32>
    %cst_105 = arith.constant dense<0.000000e+00> : vector<16xf32>
    %173 = vector.multi_reduction <add>, %172, %cst_105 [1] : vector<16x16xf32> to vector<16xf32>
    %174 = vector.shape_cast %173 : vector<16xf32> to vector<16x1xf32>
    %175 = tpu.reciprocal %174 : vector<16x1xf32> -> vector<16x1xf32>
    %cst_106 = arith.constant 1.250000e-01 : f32
    %176 = vector.broadcast %cst_106 : f32 to vector<16x1xf32>
    %177 = arith.mulf %175, %176 : vector<16x1xf32>
    %178 = vector.broadcast %177 : vector<16x1xf32> to vector<16x16xf32>
    %179 = arith.mulf %172, %178 : vector<16x16xf32>
    %cst_107 = arith.constant dense<0.000000e+00> : vector<16x8xf32>
    %180 = tpu.matmul %179, %166, %cst_107 {dimension_numbers = #tpu.dot_dimension_numbers<[1], [0], [0], [1], [0, 0, 1, 1], [], []>} : vector<16x16xf32>, vector<16x8xf32>, vector<16x8xf32> -> vector<16x8xf32>
    %c0_108 = arith.constant 0 : index
    %c0_109 = arith.constant 0 : index
    %c56_110 = arith.constant 56 : index
    %181 = vector.load %arg2[%c0_108, %c0_109, %c56_110] : memref<1x16x64xf32, #tpu.memory_space<vmem>>, vector<1x16x8xf32>
    %182 = vector.shape_cast %181 : vector<1x16x8xf32> to vector<16x8xf32>
    %183 = vector.shape_cast %180 : vector<16x8xf32> to vector<1x16x8xf32>
    tpu.vector_store %arg2[%c0_108, %c0_109, %c56_110], %183 {strides = array<i32>} : memref<1x16x64xf32, #tpu.memory_space<vmem>>, vector<1x16x8xf32>,
    return
  }
  func.func @transform_0(%arg0: i32) -> (i32, i32, i32) {
    %c0_i32 = arith.constant 0 : i32
    %c0_i32_0 = arith.constant 0 : i32
    %c0_i32_1 = arith.constant 0 : i32
    return %arg0, %c0_i32, %c0_i32_0 : i32, i32, i32
  }
  func.func @transform_1(%arg0: i32) -> (i32, i32, i32) {
    %c0_i32 = arith.constant 0 : i32
    %c0_i32_0 = arith.constant 0 : i32
    %c0_i32_1 = arith.constant 0 : i32
    return %arg0, %c0_i32, %c0_i32_0 : i32, i32, i32
  }
}

</mosaic_0001>

<bundles_post_ra>
// kernel: multi_head_attention_forward.5
= control target key start
LH: loop header
LB: loop body
LE: loop exit
PB: predicated region body
PF: predicated region fallthrough
CT: control target
= control target key end

     0   :  { %s305_s0 = inlined_call_operand.vmem [shape: f32[32,64], index: 0, kind: input, shape index: {}]   ;;  %s306_s1 = inlined_call_operand.vmem [shape: f32[64,64], index: 1, kind: input, shape index: {}]   ;;  %s307_s2 = inlined_call_operand.vmem [shape: f32[1,64], index: 2, kind: input, shape index: {}]   ;;  %s308_s3 = inlined_call_operand.hbm [shape: f32[32,64], index: 3, kind: output, shape index: {}]  }
   0x1   :  { %v26_v0 = vld [vmem:[%s306_s1 + $0x38] sm:$0xff]  ;;  %v25_v1 = vld [vmem:[%s306_s1 + $0x30] sm:$0xff]  ;;  %v24_v2 = vld [vmem:[%s306_s1 + $0x28] sm:$0xff] }
   0x2   :  { %169 = vmatprep.subr.mxu0 %v26_v0  ;;  %191 = vmatprep.subr.mxu1 %v26_v0  ;;  %v23_v3 = vld [vmem:[%s306_s1 + $0x20] sm:$0xff] }
   0x3   :  { %170 = vmatpush3.msra.mxu0 %v26_v0  ;;  %199 = vmatpush3.msra.mxu1 %v26_v0 }
   0x4   :  { %171 = vmatprep.subr.mxu0 %v25_v1  ;;  %192 = vmatprep.subr.mxu1 %v25_v1 }
   0x5   :  { %172 = vmatpush3.msra.mxu0 %v25_v1  ;;  %200 = vmatpush3.msra.mxu1 %v25_v1 }
   0x6   :  { %8 = vsyncpa [#allocation3], 0  ;;  %173 = vmatprep.subr.mxu0 %v24_v2  ;;  %193 = vmatprep.subr.mxu1 %v24_v2  ;;  %v22_v4 = vld [vmem:[%s306_s1 + $0x18] sm:$0xff]  ;;  %v21_v5 = vld [vmem:[%s306_s1 + $0x10] sm:$0xff]  ;;  %vm34_vm0 = vcmask 523264   ;;  %s232_s10 = smov [#allocation2]  }
   0x7   :  { %174 = vmatpush3.msra.mxu0 %v24_v2  ;;  %201 = vmatpush3.msra.mxu1 %v24_v2  ;;  %v20_v6 = vld [vmem:[%s306_s1 + $0x8] sm:$0xff]  ;;  %v19_v7 = vld [vmem:[%s306_s1] sm:$0xff]  ;;  %v17_v9 = vld [vmem:[%s305_s0 + $0x10] sm:$0xff]  ;;  %s141_s11 = sshll.u32 %s232_s10, 4  ;;  %s142_s11 = int_to_ptr.vmem [resolvable:$true] %s141_s11 }
   0x8   :  { %175 = vmatprep.subr.mxu0 %v23_v3  ;;  %194 = vmatprep.subr.mxu1 %v23_v3  ;;  %v15_v8 = vld [vmem:[%s305_s0] sm:$0xff]  ;;  %v16_v10 = vld [vmem:[%s305_s0 + $0x8] sm:$0xff]  ;;  %v18_v11 = vld [vmem:[%s305_s0 + $0x18] sm:$0xff]  ;;  %s210_s0 = scalar_lea.vmem %s142_s11, 512  ;;  %p215_p1 = scmp.lt.s32.totalorder %s142_s11, %s142_s11 }
   0x9   :  { %176 = vmatpush3.msra.mxu0 %v23_v3  ;;  %202 = vmatpush3.msra.mxu1 %v23_v3  ;;  %v152_v12 = vld [vmem:[%s307_s2] ss:$0 sm:$0xff]  ;;  %p211_p0 = scmp.ne.s32.totalorder %s142_s11, %s210_s0  ;;  %p216_p2 = scmp.lt.s32.totalorder %s210_s0, %s210_s0 }
   0xa   :  { %177 = vmatprep.subr.mxu0 %v22_v4  ;;  %195 = vmatprep.subr.mxu1 %v22_v4 }
   0xb   :  { %178 = vmatpush3.msra.mxu0 %v22_v4  ;;  %203 = vmatpush3.msra.mxu1 %v22_v4  ;;  %p217_p3 = por %p216_p2, %p215_p1 }
   0xc   :  { %179 = vmatprep.subr.mxu0 %v21_v5  ;;  %196 = vmatprep.subr.mxu1 %v21_v5 }
   0xd   :  { %180 = vmatpush3.msra.mxu0 %v21_v5  ;;  %204 = vmatpush3.msra.mxu1 %v21_v5  ;;  %p218_p4 = pnand %p217_p3, %p211_p0 }
   0xe   :  { %181 = vmatprep.subr.mxu0 %v20_v6  ;;  %197 = vmatprep.subr.mxu1 %v20_v6 }
   0xf   :  { %182 = vmatpush3.msra.mxu0 %v20_v6  ;;  %205 = vmatpush3.msra.mxu1 %v20_v6 }
  0x10   :  { %183 = vmatprep.subr.mxu0 %v19_v7  ;;  %198 = vmatprep.subr.mxu1 %v19_v7 }
  0x11   :  { %184 = vmatpush3.msra.mxu0 %v19_v7  ;;  %206 = vmatpush3.msra.mxu1 %v19_v7 }
  0x12   :  { %185 = vmatprep.mubr.msk.f32.mxu0 %vm34_vm0, %v15_v8  ;;  %188 = vmatprep.mubr.msk.f32.mxu1 %vm34_vm0, %v17_v9 }
  0x13   :  { %186 = vmatmul.mubr.msk.f32.vlgmr.msra.gmra.mxu0 %vm34_vm0, %v16_v10  ;;  %189 = vmatmul.mubr.msk.f32.vlgmr.msra.gmra.mxu1 %vm34_vm0, %v18_v11 }
  0xd3   :  { %v187_v13 = vpop.f32.mrf.mxu0  ;;  %v190_v14 = vpop.f32.mrf.mxu1 }
  0xd4   :  { %v119_v15 = vadd.f32 %v187_v13, %v152_v12  ;;  %v129_v16 = vadd.f32 %v190_v14, %v152_v12 }
  0xd5   :  { %v113_v17 = vpop.f32.mrf.mxu0  ;;  %v123_v18 = vpop.f32.mrf.mxu1 }
  0xd6   :  { %133 = vst.msk [vmem:[#allocation2 + $0x8] sm:$0xff] %vm34_vm0, %v119_v15  ;;  %135 = vst.msk [vmem:[#allocation2 + $0x18] sm:$0xff] %vm34_vm0, %v129_v16  ;;  %v114_v19 = vadd.f32 %v152_v12, %v113_v17  ;;  %v124_v20 = vadd.f32 %v152_v12, %v123_v18 }
  0xd8   :  { %132 = vst.msk [vmem:[#allocation2] sm:$0xff] %vm34_vm0, %v114_v19  ;;  %134 = vst.msk [vmem:[#allocation2 + $0x10] sm:$0xff] %vm34_vm0, %v124_v20 }
  0xd9   :  { %221 = shalt.err (!%p218_p4)
}
  0xda   :  { %s233_s2 = smov 128   ;;  %s234_s12 = smov 8  }
  0xdb   :  { %147 = dma.vmem_to_hbm [thread:$0]  %s142_s11, 512, %s308_s3, [#allocation3], %s233_s2, %s233_s2, %s234_s12  }
  0xdc   :  { %230 = dma.done.wait [#allocation3], 512  }
  0xdd   :  { %231 = vsyncadd [#allocation3], 4294966784 }
  0xde   :  { %151 = vsyncpa [#allocation3], 1 }

// kernel: multi_head_attention_forward.3
= control target key start
LH: loop header
LB: loop body
LE: loop exit
PB: predicated region body
PF: predicated region fallthrough
CT: control target
= control target key end

     0   :  { %8 = vsyncpa [#allocation3], 0  ;;  %s329_s0 = inlined_call_operand.hbm [shape: f32[32,64], index: 0, kind: input, shape index: {}]   ;;  %s330_s1 = inlined_call_operand.hbm [shape: f32[64,192], index: 1, kind: input, shape index: {}]   ;;  %s331_s2 = inlined_call_operand.vmem [shape: f32[1,192], index: 2, kind: input, shape index: {}]   ;;  %s332_s3 = inlined_call_operand.vmem [shape: f32[32,192], index: 3, kind: output, shape index: {}]  }
   0x1   :  { %9 = vsyncpa [#allocation5], 0  ;;  %s261_s12 = smov [#allocation2]  }
   0x2   :  { %s15_s13 = sshll.u32 %s261_s12, 4  ;;  %s16_s13 = int_to_ptr.vmem [resolvable:$true] %s15_s13 }
   0x3   :  { %s225_s14 = scalar_lea.vmem %s16_s13, 512  ;;  %p230_p1 = scmp.lt.s32.totalorder %s16_s13, %s16_s13 }
   0x4   :  { %p226_p0 = scmp.ne.s32.totalorder %s16_s13, %s225_s14  ;;  %p231_p2 = scmp.lt.s32.totalorder %s225_s14, %s225_s14 }
   0x6   :  { %p232_p3 = por %p231_p2, %p230_p1 }
   0x8   :  { %p233_p4 = pnand %p232_p3, %p226_p0 }
   0xa   :  { %236 = shalt.err (!%p233_p4)
}
   0xb   :  { %s262_s15 = smov 128   ;;  %s263_s16 = smov 8  }
   0xc   :  { %21 = dma.hbm_to_vmem [thread:$0]  %s329_s0, 512, %s16_s13, [#allocation3], %s262_s15, %s262_s15, %s263_s16  }
   0xd   :  { %s264_s19 = smov [#allocation4]  }
   0xe   :  { %s27_s20 = sshll.u32 %s264_s19, 4  ;;  %s28_s20 = int_to_ptr.vmem [resolvable:$true] %s27_s20 }
   0xf   :  { %s245_s21 = scalar_lea.vmem %s28_s20, 2048  ;;  %p250_p6 = scmp.lt.s32.totalorder %s28_s20, %s28_s20 }
  0x10   :  { %p246_p5 = scmp.ne.s32.totalorder %s28_s20, %s245_s21  ;;  %p251_p7 = scmp.lt.s32.totalorder %s245_s21, %s245_s21 }
  0x12   :  { %p252_p8 = por %p251_p7, %p250_p6 }
  0x14   :  { %p253_p9 = pnand %p252_p8, %p246_p5 }
  0x16   :  { %256 = shalt.err (!%p253_p9)
}
  0x17   :  { %s265_s22 = smov 256   ;;  %s266_s23 = smov 16  }
  0x18   :  { %33 = dma.hbm_to_vmem [thread:$0]  %s330_s1, 2048, %s28_s20, [#allocation5], %s265_s22, %s265_s22, %s266_s23  }
  0x19   :  { %257 = dma.done.wait [#allocation3], 512  }
  0x1a   :  { %258 = vsyncadd [#allocation3], 4294966784 }
  0x1b   :  { %259 = dma.done.wait [#allocation5], 2048  }
  0x1c   :  { %260 = vsyncadd [#allocation5], 4294965248  ;;  %v267_v0 = vmov 0.0   ;;  %v61_v1 = vld [vmem:[#allocation4 + $0x78] sm:$0xff]  ;;  %v60_v2 = vld [vmem:[#allocation4 + $0x70] sm:$0xff]  ;;  %vm74_vm0 = vcmask 523264   ;;  %v64_v21 = vlaneseq }
  0x1d   :  { %151 = vmatprep.mubr.f32.mxu0 %v267_v0  ;;  %163 = vmatprep.mubr.f32.mxu1 %v267_v0  ;;  %v59_v3 = vld [vmem:[#allocation4 + $0x68] sm:$0xff]  ;;  %v58_v4 = vld [vmem:[#allocation4 + $0x60] sm:$0xff]  ;;  %v57_v5 = vld [vmem:[#allocation4 + $0x58] sm:$0xff] }
  0x1e   :  { %103 = vmatprep.subr.mxu0 %v61_v1  ;;  %194 = vmatprep.subr.mxu1 %v61_v1  ;;  %v56_v6 = vld [vmem:[#allocation4 + $0x50] sm:$0xff]  ;;  %v55_v7 = vld [vmem:[#allocation4 + $0x48] sm:$0xff]  ;;  %v54_v8 = vld [vmem:[#allocation4 + $0x40] sm:$0xff]  ;;  %v65_v22 = vshrl.u32 %v64_v21, 7 }
  0x1f   :  { %104 = vmatpush1.msra.mxu0 %v60_v2  ;;  %202 = vmatpush1.msra.mxu1 %v60_v2  ;;  %v53_v9 = vld [vmem:[#allocation4 + $0x38] sm:$0xff]  ;;  %v52_v10 = vld [vmem:[#allocation4 + $0x30] sm:$0xff]  ;;  %v51_v11 = vld [vmem:[#allocation4 + $0x28] sm:$0xff] }
  0x20   :  { %105 = vmatprep.subr.mxu0 %v59_v3  ;;  %195 = vmatprep.subr.mxu1 %v59_v3  ;;  %v50_v12 = vld [vmem:[#allocation4 + $0x20] sm:$0xff]  ;;  %v49_v13 = vld [vmem:[#allocation4 + $0x18] sm:$0xff]  ;;  %v48_v14 = vld [vmem:[#allocation4 + $0x10] sm:$0xff]  ;;  %v66_v23 = vsub.s32 0, %v65_v22  ;;  %v70_v25 = vsub.s32 1, %v65_v22 }
  0x21   :  { %106 = vmatpush1.msra.mxu0 %v58_v4  ;;  %203 = vmatpush1.msra.mxu1 %v58_v4  ;;  %v47_v15 = vld [vmem:[#allocation4 + $0x8] sm:$0xff]  ;;  %v46_v16 = vld [vmem:[#allocation4] sm:$0xff]  ;;  %v44_v18 = vld [vmem:[#allocation2 + $0x10] sm:$0xff] }
  0x22   :  { %107 = vmatprep.subr.mxu0 %v57_v5  ;;  %196 = vmatprep.subr.mxu1 %v57_v5  ;;  %v42_v17 = vld [vmem:[#allocation2] sm:$0xff]  ;;  %v43_v19 = vld [vmem:[#allocation2 + $0x8] sm:$0xff]  ;;  %v45_v20 = vld [vmem:[#allocation2 + $0x18] sm:$0xff] }
  0x23   :  { %108 = vmatpush1.msra.mxu0 %v56_v6  ;;  %204 = vmatpush1.msra.mxu1 %v56_v6  ;;  %v62_v24 = vld [vmem:[%s331_s2] sm:$0x3] }
  0x24   :  { %109 = vmatprep.subr.mxu0 %v55_v7  ;;  %197 = vmatprep.subr.mxu1 %v55_v7  ;;  %v67_v26 = vrot.slane %v62_v24, %v66_v23  ;;  %v71_v27 = vrot.slane %v62_v24, %v70_v25 }
  0x25   :  { %110 = vmatpush1.msra.mxu0 %v54_v8  ;;  %205 = vmatpush1.msra.mxu1 %v54_v8 }
  0x26   :  { %111 = vmatprep.subr.mxu0 %v53_v9  ;;  %198 = vmatprep.subr.mxu1 %v53_v9 }
  0x27   :  { %112 = vmatpush1.msra.mxu0 %v52_v10  ;;  %206 = vmatpush1.msra.mxu1 %v52_v10 }
  0x28   :  { %113 = vmatprep.subr.mxu0 %v51_v11  ;;  %199 = vmatprep.subr.mxu1 %v51_v11 }
  0x29   :  { %114 = vmatpush1.msra.mxu0 %v50_v12  ;;  %207 = vmatpush1.msra.mxu1 %v50_v12 }
  0x2a   :  { %115 = vmatprep.subr.mxu0 %v49_v13  ;;  %200 = vmatprep.subr.mxu1 %v49_v13 }
  0x2b   :  { %116 = vmatpush1.msra.mxu0 %v48_v14  ;;  %208 = vmatpush1.msra.mxu1 %v48_v14 }
  0x2c   :  { %117 = vmatprep.subr.mxu0 %v47_v15  ;;  %201 = vmatprep.subr.mxu1 %v47_v15 }
  0x2d   :  { %118 = vmatpush1.msra.mxu0 %v46_v16  ;;  %209 = vmatpush1.msra.mxu1 %v46_v16 }
  0x2e   :  { %190 = vmatmul.mubr.msk.f32.vlgmr.msra.gmra.mxu0 %vm74_vm0, %v42_v17  ;;  %192 = vmatmul.mubr.msk.f32.vlgmr.msra.gmra.mxu1 %vm74_vm0, %v44_v18 }
  0x2f   :  { %157 = vmatprep.mubr.f32.mxu0 %v267_v0  ;;  %169 = vmatprep.mubr.f32.mxu1 %v267_v0 }
  0x32   :  { %191 = vmatmul.mubr.msk.f32.gmra.mxu0 %vm74_vm0, %v43_v19  ;;  %193 = vmatmul.mubr.msk.f32.gmra.mxu1 %vm74_vm0, %v45_v20 }
  0xee   :  { %v153_v28 = vpop.f32.mrf.mxu0  ;;  %v165_v29 = vpop.f32.mrf.mxu1 }
  0xef   :  { %v154_v30 = vadd.f32 %v153_v28, %v67_v26  ;;  %v166_v31 = vadd.f32 %v165_v29, %v67_v26 }
  0xf0   :  { %v155_v32 = vpop.f32.mrf.mxu0  ;;  %v167_v33 = vpop.f32.mrf.mxu1 }
  0xf1   :  { %176 = vst [vmem:[%s332_s3] sm:$0xff] %v154_v30  ;;  %180 = vst [vmem:[%s332_s3 + $0x20] sm:$0xff] %v166_v31  ;;  %v156_v34 = vadd.f32 %v155_v32, %v71_v27  ;;  %v168_v35 = vadd.f32 %v167_v33, %v71_v27 }
  0xf2   :  { %v159_v36 = vpop.f32.mrf.mxu0  ;;  %v171_v37 = vpop.f32.mrf.mxu1 }
  0xf3   :  { %177 = vst.msk [vmem:[%s332_s3 + $0x8] sm:$0xff] %vm74_vm0, %v156_v34  ;;  %181 = vst.msk [vmem:[%s332_s3 + $0x28] sm:$0xff] %vm74_vm0, %v168_v35  ;;  %v160_v38 = vadd.f32 %v159_v36, %v67_v26  ;;  %v172_v39 = vadd.f32 %v171_v37, %v67_v26 }
  0xf4   :  { %v161_v40 = vpop.f32.mrf.mxu0  ;;  %v173_v41 = vpop.f32.mrf.mxu1 }
  0xf5   :  { %178 = vst [vmem:[%s332_s3 + $0x10] sm:$0xff] %v160_v38  ;;  %182 = vst [vmem:[%s332_s3 + $0x30] sm:$0xff] %v172_v39  ;;  %v162_v42 = vadd.f32 %v161_v40, %v71_v27  ;;  %v174_v43 = vadd.f32 %v173_v41, %v71_v27 }
  0xf7   :  { %179 = vst.msk [vmem:[%s332_s3 + $0x18] sm:$0xff] %vm74_vm0, %v162_v42  ;;  %183 = vst.msk [vmem:[%s332_s3 + $0x38] sm:$0xff] %vm74_vm0, %v174_v43 }
  0xf8   :  { %188 = vsyncpa [#allocation3], 1 }
  0xf9   :  { %189 = vsyncpa [#allocation5], 1 }

// kernel: multi_head_attention_forward.4
= control target key start
LH: loop header
LB: loop body
LE: loop exit
PB: predicated region body
PF: predicated region fallthrough
CT: control target
= control target key end

     0   :  { %s2278_s6 = smov 0   ;;  %s2565_s0 = inlined_call_operand.vmem [shape: f32[2,16,192], index: 0, kind: input, shape index: {}]   ;;  %s2566_s1 = inlined_call_operand.vmem [shape: f32[2,16,64], index: 1, kind: output, shape index: {}]  }
   0x1 LB: > { %s1921_s7 = sadd.s32 4294967295, %s2251_s6   ;;  %p1925_p0 = scmp.ge.s32.totalorder %s2251_s6, 1  ;;  %s2251_s6 = sphi %s2278_s6, %s11_s6  }
   0x2   : > { %p87_p1 = scmp.lt.s32.totalorder %s2251_s6, 3 }
   0x4   : > { %p88_p2 = pnand %p1925_p0, %p87_p1 }
   0x5   : > { %p107_p3 = scmp.lt.s32.totalorder (!%p88_p2), %s1921_s7, 1  ;;  %s2253_s12 = smov (!%p88_p2), 64  }
   0x6   : > { %91 = sbr.rel (%p88_p2) target bundleno = 4592 (0x11f0), region = 24  ;;  %s2254_s13 = smov (!%p88_p2), 56  }
   0x7   : > { %s2255_s14 = smov (!%p88_p2), 120   ;;  %s2256_s19 = smov (!%p88_p2), 48  }
   0x8   : > { %s2257_s20 = smov (!%p88_p2), 112   ;;  %s2258_s21 = smov (!%p88_p2), 40  }
   0x9   : > { %s2259_s22 = smov (!%p88_p2), 104   ;;  %s2260_s23 = smov (!%p88_p2), 32  }
   0xa   : > { %s2261_s24 = smov (!%p88_p2), 96   ;;  %s2262_s25 = smov (!%p88_p2), 24  }
   0xb   : > { %s2568_s7 = smov (!%p107_p3, %s1921_s7), 1  ;;  %vm127_vm0 = vcmask 64512   ;;  %vm211_vm1 = vcmask 130048   ;;  %s2263_s26 = smov 88   ;;  %vm537_vm2 = vcmask 130112   ;;  %vm758_vm3 = vcmask 195712  }
   0xc   : > { %s1980_s8 = sshll.u32 %s2568_s7, 5  ;;  %s1981_s15 = sshll.u32 %s2568_s7, 4  ;;  %vm979_vm4 = vcmask 261312   ;;  %vm1200_vm5 = vcmask 326912   ;;  %vm1421_vm6 = vcmask 392512   ;;  %vm1642_vm7 = vcmask 458112  }
   0xd   : > { %s2292_s11 = scalar_lea.vmem %s2565_s0, %s1980_s8  ;;  %s2344_s18 = scalar_lea.vmem %s2566_s1, %s1981_s15  ;;  %vm1863_vm8 = vcmask 523712  }
   0xe   : > { %v2295_v0 = vld [vmem:[%s2292_s11 + $0x10] sm:$0xff]  ;;  %v2298_v1 = vld [vmem:[%s2292_s11] sm:$0xff]  ;;  %v2317_v18 = vld [vmem:[%s2292_s11 + $0x18] sm:$0xff]  ;;  %s2264_s27 = smov 16   ;;  %s2265_s28 = smov 80  }
   0xf   : > { %125 = vrot.lane.b32.xlu0 %v2295_v0, %s2253_s12  ;;  %2050 = vmatprep.mubr.msk.f32.mxu0 %vm127_vm0, %v2298_v1  ;;  %v2322_v19 = vld [vmem:[%s2292_s11 + $0x8] sm:$0xff]  ;;  %s2266_s29 = smov 8   ;;  %s2267_s30 = smov 72  }
  0x10   : > { %2053 = vmatprep.subr.mxu1 %v2317_v18 }
  0x11   : > { %2054 = vmatpush3.msra.mxu1 %v2317_v18 }
  0x12   : > { %2055 = vmatprep.subr.mxu1 %v2322_v19 }
  0x13   : > { %123 = vrot.lane.b32.xlu0 %v2298_v1, %s2253_s12  ;;  %2056 = vmatpush3.msra.mxu1 %v2322_v19 }
  0x81   : > { %v126_v2 = vpop.permute.xlu0 %125 }
  0x82   : > { %2046 = vmatprep.subr.msk.mxu0 %vm127_vm0, %v126_v2 }
  0x83   : > { %2047 = vmatpush3.xpose.msk.msra.mxu0 %vm127_vm0, %v126_v2 }
  0x85   : > { %v124_v3 = vpop.permute.xlu0 %123 }
  0x86   : > { %2048 = vmatprep.subr.msk.mxu0 %vm127_vm0, %v124_v3 }
  0x87   : > { %2049 = vmatpush3.xpose.msk.msra.mxu0 %vm127_vm0, %v124_v3 }
  0x8a   : > { %2051 = vmatmul.mubr.msk.f32.vlgmr.msra.gmra.mxu0 %vm127_vm0, %v2295_v0 }
 0x14a   : > { %v2052_v4 = vpop.f32.mrf.mxu0 }
 0x14b   : > { %v215_v7 = vsel %vm211_vm1, %v2052_v4, -inf }
 0x14c   : > { %v202_v5 = vpop.f32.mrf.mxu0 }
 0x14d   : > { %v212_v6 = vsel %vm211_vm1, %v202_v5, -inf }
 0x14e   : > { %213 = vmax.xlane.f32.xlu1 %v212_v6 }
 0x152   : > { %216 = vmax.xlane.f32.xlu1 %v215_v7 }
 0x1d7   : > { %v214_v8 = vpop.xlane.xlu1 %213 }
 0x1d8   : > { %v218_v9 = vsub.f32 %v202_v5, %v214_v8 }
 0x1da   : > { %v220_v10 = vmul.f32 1.442695, %v218_v9 }
 0x1db   : > { %v217_v11 = vpop.xlane.xlu1 %216 }
 0x1dc   : > { %2181 = vpow2.f32 %v220_v10  ;;  %v219_v12 = vsub.f32 %v2052_v4, %v217_v11 }
 0x1de   : > { %v222_v13 = vmul.f32 1.442695, %v219_v12 }
 0x1e0   : > { %2183 = vpow2.f32 %v222_v13 }
 0x1e9   : > { %v2182_v14 = vpop.eup %2181 }
 0x1ea   : > { %v224_v15 = vsel %vm211_vm1, %v2182_v14, 0.0 }
 0x1eb   : > { %225 = vadd.xlane.f32.xlu0 %v224_v15 }
 0x1ed   : > { %v2184_v16 = vpop.eup %2183 }
 0x1ee   : > { %v227_v17 = vsel %vm211_vm1, %v2184_v16, 0.0 }
 0x1ef   : > { %228 = vadd.xlane.f32.xlu1 %v227_v17 }
 0x200   : > { %331 = vrot.lane.b32.xlu1 %v2295_v0, %s2254_s13 }
 0x204   : > { %329 = vrot.lane.b32.xlu1 %v2298_v1, %s2254_s13 }
 0x208   : > { %325 = vrot.lane.b32.xlu1 %v2298_v1, %s2255_s14 }
 0x20c   : > { %327 = vrot.lane.b32.xlu1 %v2295_v0, %s2255_s14 }
 0x274   : > { %v226_v20 = vpop.xlane.xlu0 %225 }
 0x275   : > { %2185 = vrcp.f32 %v226_v20 }
 0x278   : > { %v229_v21 = vpop.xlane.xlu1 %228 }
 0x279   : > { %2187 = vrcp.f32 %v229_v21 }
 0x27c   : > { %v332_v22 = vpop.permute.xlu1 %331 }
 0x27d   : > { %2060 = vmatprep.subr.msk.mxu1 %vm127_vm0, %v332_v22 }
 0x280   : > { %v330_v25 = vpop.permute.xlu1 %329 }
 0x282   : > { %v2186_v23 = vpop.eup %2185 }
 0x283   : > { %v232_v24 = vmul.f32 0.125, %v2186_v23 }
 0x284   : > { %v326_v30 = vpop.permute.xlu1 %325 }
 0x285   : > { %v234_v26 = vmul.f32 %v2182_v14, %v232_v24 }
 0x286   : > { %v2188_v27 = vpop.eup %2187 }
 0x287   : > { %v233_v28 = vmul.f32 0.125, %v2188_v27  ;;  %2057 = vmatprep.mubr.msk.f32.mxu1 %vm211_vm1, %v234_v26 }
 0x288   : > { %v328_v31 = vpop.permute.xlu1 %327 }
 0x289   : > { %v235_v29 = vmul.f32 %v2184_v16, %v233_v28 }
 0x28b   : > { %2058 = vmatmul.mubr.msk.f32.vlgmr.msra.gmra.mxu1 %vm211_vm1, %v235_v29 }
 0x28c   : > { %2061 = vmatpush3.xpose.msk.msra.mxu1 %vm127_vm0, %v332_v22  ;;  %2064 = vmatprep.mubr.msk.f32.mxu1 %vm127_vm0, %v326_v30 }
 0x28d   : > { %2062 = vmatprep.subr.msk.mxu1 %vm127_vm0, %v330_v25 }
 0x290   : > { %2063 = vmatpush3.xpose.msk.msra.mxu1 %vm127_vm0, %v330_v25 }
 0x293   : > { %2065 = vmatmul.mubr.msk.f32.vlgmr.msra.gmra.mxu1 %vm127_vm0, %v328_v31 }
 0x34b   : > { %v2059_v32 = vpop.f32.mrf.mxu1 }
 0x34c   : > { %318 = vst.msk [vmem:[%s2344_s18 + $0x8] sm:$0xff] %vm127_vm0, %v2059_v32 }
 0x34d   : > { %v308_v33 = vpop.f32.mrf.mxu1 }
 0x34e   : > { %317 = vst.msk [vmem:[%s2344_s18] sm:$0xff] %vm127_vm0, %v308_v33 }
 0x353   : > { %v2066_v34 = vpop.f32.mrf.mxu1 }
 0x354   : > { %v419_v35 = vsel %vm211_vm1, %v2066_v34, -inf }
 0x355   : > { %420 = vmax.xlane.f32.xlu1 %v419_v35  ;;  %v407_v36 = vpop.f32.mrf.mxu1 }
 0x356   : > { %v416_v37 = vsel %vm211_vm1, %v407_v36, -inf }
 0x357   : > { %417 = vmax.xlane.f32.xlu0 %v416_v37 }
 0x366   : > { %550 = vrot.lane.b32.xlu1 %v2298_v1, %s2256_s19 }
 0x36d   : > { %444 = vrot.lane.b32.xlu0 %v2317_v18, %s2255_s14 }
 0x371   : > { %442 = vrot.lane.b32.xlu0 %v2322_v19, %s2255_s14 }
 0x3de   : > { %v421_v38 = vpop.xlane.xlu1 %420 }
 0x3df   : > { %v423_v39 = vsub.f32 %v2066_v34, %v421_v38 }
 0x3e0   : > { %v418_v40 = vpop.xlane.xlu0 %417 }
 0x3e1   : > { %v426_v41 = vmul.f32 1.442695, %v423_v39  ;;  %v422_v42 = vsub.f32 %v407_v36, %v418_v40 }
 0x3e2   : > { %v551_v60 = vpop.permute.xlu1 %550 }
 0x3e3   : > { %2189 = vpow2.f32 %v426_v41  ;;  %v424_v43 = vmul.f32 1.442695, %v422_v42 }
 0x3e4   : > { %v445_v44 = vpop.permute.xlu0 %444 }
 0x3e5   : > { %2191 = vpow2.f32 %v424_v43  ;;  %2067 = vmatprep.subr.mxu0 %v445_v44 }
 0x3e6   : > { %2068 = vmatpush3.msra.mxu0 %v445_v44 }
 0x3e8   : > { %v443_v45 = vpop.permute.xlu0 %442 }
 0x3e9   : > { %2069 = vmatprep.subr.mxu0 %v443_v45 }
 0x3ea   : > { %2070 = vmatpush3.msra.mxu0 %v443_v45 }
 0x3f0   : > { %v2190_v46 = vpop.eup %2189 }
 0x3f1   : > { %v431_v47 = vsel %vm211_vm1, %v2190_v46, 0.0 }
 0x3f2   : > { %v2192_v48 = vpop.eup %2191  ;;  %432 = vadd.xlane.f32.xlu0 %v431_v47 }
 0x3f3   : > { %v428_v49 = vsel %vm211_vm1, %v2192_v48, 0.0 }
 0x3f6   : > { %429 = vadd.xlane.f32.xlu0 %v428_v49 }
 0x40c   : > { %552 = vrot.lane.b32.xlu0 %v2295_v0, %s2256_s19 }
 0x410   : > { %546 = vrot.lane.b32.xlu0 %v2298_v1, %s2257_s20 }
 0x414   : > { %548 = vrot.lane.b32.xlu0 %v2295_v0, %s2257_s20 }
 0x47b   : > { %v433_v50 = vpop.xlane.xlu0 %432 }
 0x47c   : > { %2193 = vrcp.f32 %v433_v50 }
 0x47f   : > { %v430_v51 = vpop.xlane.xlu0 %429 }
 0x480   : > { %2195 = vrcp.f32 %v430_v51 }
 0x483   : > { %v553_v52 = vpop.permute.xlu0 %552 }
 0x484   : > { %2074 = vmatprep.subr.msk.mxu0 %vm127_vm0, %v553_v52 }
 0x487   : > { %v547_v59 = vpop.permute.xlu0 %546 }
 0x489   : > { %v2194_v53 = vpop.eup %2193 }
 0x48a   : > { %v437_v55 = vmul.f32 0.125, %v2194_v53 }
 0x48b   : > { %v549_v61 = vpop.permute.xlu0 %548 }
 0x48c   : > { %v439_v58 = vmul.f32 %v2190_v46, %v437_v55 }
 0x48d   : > { %v2196_v54 = vpop.eup %2195 }
 0x48e   : > { %v436_v56 = vmul.f32 0.125, %v2196_v54 }
 0x490   : > { %v438_v57 = vmul.f32 %v2192_v48, %v436_v56 }
 0x492   : > { %2071 = vmatprep.mubr.msk.f32.mxu0 %vm211_vm1, %v438_v57 }
 0x493   : > { %2072 = vmatmul.mubr.msk.f32.vlgmr.msra.gmra.mxu0 %vm211_vm1, %v439_v58 }
 0x494   : > { %2075 = vmatpush3.xpose.msk.msra.mxu0 %vm127_vm0, %v553_v52  ;;  %2078 = vmatprep.mubr.msk.f32.mxu0 %vm127_vm0, %v547_v59 }
 0x495   : > { %2076 = vmatprep.subr.msk.mxu0 %vm127_vm0, %v551_v60 }
 0x498   : > { %2077 = vmatpush3.xpose.msk.msra.mxu0 %vm127_vm0, %v551_v60 }
 0x49b   : > { %2079 = vmatmul.mubr.msk.f32.vlgmr.msra.gmra.mxu0 %vm127_vm0, %v549_v61 }
 0x553   : > { %v2374_v62 = vpop.f32.mrf.mxu0 }
 0x555   : > { %v2376_v63 = vpop.f32.mrf.mxu0 }
 0x55b   : > { %v2080_v2 = vpop.f32.mrf.mxu0 }
 0x55c   : > { %v640_v3 = vsel %vm211_vm1, %v2080_v2, -inf }
 0x55d   : > { %641 = vmax.xlane.f32.xlu1 %v640_v3  ;;  %v628_v4 = vpop.f32.mrf.mxu0 }
 0x55e   : > { %v637_v5 = vsel %vm211_vm1, %v628_v4, -inf }
 0x55f   : > { %638 = vmax.xlane.f32.xlu0 %v637_v5 }
 0x56e   : > { %663 = vrot.lane.b32.xlu1 %v2322_v19, %s2257_s20 }
 0x572   : > { %773 = vrot.lane.b32.xlu1 %v2295_v0, %s2258_s21 }
 0x576   : > { %767 = vrot.lane.b32.xlu1 %v2298_v1, %s2259_s22 }
 0x5e6   : > { %v642_v6 = vpop.xlane.xlu1 %641 }
 0x5e7   : > { %v644_v7 = vsub.f32 %v2080_v2, %v642_v6 }
 0x5e8   : > { %v639_v8 = vpop.xlane.xlu0 %638 }
 0x5e9   : > { %v647_v9 = vmul.f32 1.442695, %v644_v7  ;;  %v643_v10 = vsub.f32 %v628_v4, %v639_v8 }
 0x5ea   : > { %v664_v20 = vpop.permute.xlu1 %663 }
 0x5eb   : > { %2197 = vpow2.f32 %v647_v9  ;;  %v645_v11 = vmul.f32 1.442695, %v643_v10 }
 0x5ed   : > { %2199 = vpow2.f32 %v645_v11 }
 0x5ee   : > { %v774_v22 = vpop.permute.xlu1 %773 }
 0x5f2   : > { %v768_v29 = vpop.permute.xlu1 %767 }
 0x5f8   : > { %v2198_v12 = vpop.eup %2197 }
 0x5f9   : > { %v652_v13 = vsel %vm211_vm1, %v2198_v12, 0.0 }
 0x5fa   : > { %v2200_v14 = vpop.eup %2199  ;;  %653 = vadd.xlane.f32.xlu0 %v652_v13 }
 0x5fb   : > { %v649_v15 = vsel %vm211_vm1, %v2200_v14, 0.0 }
 0x5fe   : > { %650 = vadd.xlane.f32.xlu0 %v649_v15 }
 0x614   : > { %665 = vrot.lane.b32.xlu0 %v2317_v18, %s2257_s20 }
 0x618   : > { %771 = vrot.lane.b32.xlu0 %v2298_v1, %s2258_s21 }
 0x61c   : > { %769 = vrot.lane.b32.xlu0 %v2295_v0, %s2259_s22 }
 0x683   : > { %v654_v16 = vpop.xlane.xlu0 %653 }
 0x684   : > { %2201 = vrcp.f32 %v654_v16 }
 0x687   : > { %v651_v17 = vpop.xlane.xlu0 %650 }
 0x688   : > { %2203 = vrcp.f32 %v651_v17 }
 0x68b   : > { %v666_v21 = vpop.permute.xlu0 %665 }
 0x68c   : > { %2081 = vmatprep.subr.mxu1 %v666_v21 }
 0x68d   : > { %2082 = vmatpush3.msra.mxu1 %v666_v21 }
 0x68e   : > { %2083 = vmatprep.subr.mxu1 %v664_v20 }
 0x68f   : > { %2084 = vmatpush3.msra.mxu1 %v664_v20  ;;  %v772_v30 = vpop.permute.xlu0 %771 }
 0x690   : > { %2088 = vmatprep.subr.msk.mxu1 %vm127_vm0, %v774_v22 }
 0x691   : > { %v2202_v23 = vpop.eup %2201 }
 0x692   : > { %v658_v25 = vmul.f32 0.125, %v2202_v23 }
 0x693   : > { %v770_v31 = vpop.permute.xlu0 %769 }
 0x694   : > { %v660_v28 = vmul.f32 %v2198_v12, %v658_v25 }
 0x695   : > { %v2204_v24 = vpop.eup %2203 }
 0x696   : > { %v657_v26 = vmul.f32 0.125, %v2204_v24 }
 0x698   : > { %v659_v27 = vmul.f32 %v2200_v14, %v657_v26 }
 0x69a   : > { %2085 = vmatprep.mubr.msk.f32.mxu1 %vm211_vm1, %v659_v27 }
 0x69b   : > { %2086 = vmatmul.mubr.msk.f32.vlgmr.msra.gmra.mxu1 %vm211_vm1, %v660_v28 }
 0x69c   : > { %2089 = vmatpush3.xpose.msk.msra.mxu1 %vm127_vm0, %v774_v22  ;;  %2092 = vmatprep.mubr.msk.f32.mxu1 %vm127_vm0, %v768_v29 }
 0x69d   : > { %2090 = vmatprep.subr.msk.mxu1 %vm127_vm0, %v772_v30 }
 0x6a0   : > { %2091 = vmatpush3.xpose.msk.msra.mxu1 %vm127_vm0, %v772_v30 }
 0x6a3   : > { %2093 = vmatmul.mubr.msk.f32.vlgmr.msra.gmra.mxu1 %vm127_vm0, %v770_v31 }
 0x75b   : > { %v2402_v32 = vpop.f32.mrf.mxu1 }
 0x75d   : > { %v2404_v33 = vpop.f32.mrf.mxu1 }
 0x763   : > { %v2094_v34 = vpop.f32.mrf.mxu1 }
 0x764   : > { %v861_v35 = vsel %vm211_vm1, %v2094_v34, -inf }
 0x765   : > { %862 = vmax.xlane.f32.xlu0 %v861_v35  ;;  %v849_v36 = vpop.f32.mrf.mxu1 }
 0x766   : > { %v858_v37 = vsel %vm211_vm1, %v849_v36, -inf }
 0x767   : > { %859 = vmax.xlane.f32.xlu1 %v858_v37 }
 0x7ee   : > { %v863_v38 = vpop.xlane.xlu0 %862 }
 0x7ef   : > { %v865_v39 = vsub.f32 %v2094_v34, %v863_v38 }
 0x7f0   : > { %v860_v40 = vpop.xlane.xlu1 %859 }
 0x7f1   : > { %v868_v41 = vmul.f32 1.442695, %v865_v39  ;;  %v864_v42 = vsub.f32 %v849_v36, %v860_v40 }
 0x7f3   : > { %2205 = vpow2.f32 %v868_v41  ;;  %v866_v43 = vmul.f32 1.442695, %v864_v42 }
 0x7f5   : > { %2207 = vpow2.f32 %v866_v43 }
 0x800   : > { %v2206_v44 = vpop.eup %2205 }
 0x801   : > { %v873_v45 = vsel %vm211_vm1, %v2206_v44, 0.0 }
 0x802   : > { %v2208_v46 = vpop.eup %2207  ;;  %874 = vadd.xlane.f32.xlu1 %v873_v45 }
 0x803   : > { %v870_v47 = vsel %vm211_vm1, %v2208_v46, 0.0 }
 0x804   : > { %871 = vadd.xlane.f32.xlu0 %v870_v47 }
 0x813   : > { %884 = vrot.lane.b32.xlu1 %v2322_v19, %s2259_s22 }
 0x817   : > { %994 = vrot.lane.b32.xlu1 %v2295_v0, %s2260_s23 }
 0x81a   : > { %886 = vrot.lane.b32.xlu0 %v2317_v18, %s2259_s22 }
 0x81b   : > { %988 = vrot.lane.b32.xlu1 %v2298_v1, %s2261_s24 }
 0x81e   : > { %992 = vrot.lane.b32.xlu0 %v2298_v1, %s2260_s23 }
 0x822   : > { %990 = vrot.lane.b32.xlu0 %v2295_v0, %s2261_s24 }
 0x88b   : > { %v875_v48 = vpop.xlane.xlu1 %874 }
 0x88c   : > { %2209 = vrcp.f32 %v875_v48 }
 0x88d   : > { %v872_v49 = vpop.xlane.xlu0 %871 }
 0x88e   : > { %2211 = vrcp.f32 %v872_v49 }
 0x88f   : > { %v885_v50 = vpop.permute.xlu1 %884 }
 0x891   : > { %v887_v51 = vpop.permute.xlu0 %886 }
 0x892   : > { %2095 = vmatprep.subr.mxu0 %v887_v51 }
 0x893   : > { %2096 = vmatpush3.msra.mxu0 %v887_v51  ;;  %v995_v52 = vpop.permute.xlu1 %994 }
 0x894   : > { %2097 = vmatprep.subr.mxu0 %v885_v50 }
 0x895   : > { %2098 = vmatpush3.msra.mxu0 %v885_v50  ;;  %v993_v60 = vpop.permute.xlu0 %992 }
 0x896   : > { %2102 = vmatprep.subr.msk.mxu0 %vm127_vm0, %v995_v52 }
 0x897   : > { %v989_v59 = vpop.permute.xlu1 %988 }
 0x899   : > { %v2210_v53 = vpop.eup %2209  ;;  %v991_v61 = vpop.permute.xlu0 %990 }
 0x89a   : > { %v879_v55 = vmul.f32 0.125, %v2210_v53 }
 0x89b   : > { %v2212_v54 = vpop.eup %2211 }
 0x89c   : > { %v878_v56 = vmul.f32 0.125, %v2212_v54  ;;  %v881_v58 = vmul.f32 %v2206_v44, %v879_v55 }
 0x89e   : > { %v880_v57 = vmul.f32 %v2208_v46, %v878_v56 }
 0x8a0   : > { %2099 = vmatprep.mubr.msk.f32.mxu0 %vm211_vm1, %v880_v57 }
 0x8a1   : > { %2100 = vmatmul.mubr.msk.f32.vlgmr.msra.gmra.mxu0 %vm211_vm1, %v881_v58 }
 0x8a2   : > { %2103 = vmatpush3.xpose.msk.msra.mxu0 %vm127_vm0, %v995_v52  ;;  %2106 = vmatprep.mubr.msk.f32.mxu0 %vm127_vm0, %v989_v59 }
 0x8a3   : > { %2104 = vmatprep.subr.msk.mxu0 %vm127_vm0, %v993_v60 }
 0x8a6   : > { %2105 = vmatpush3.xpose.msk.msra.mxu0 %vm127_vm0, %v993_v60 }
 0x8a9   : > { %2107 = vmatmul.mubr.msk.f32.vlgmr.msra.gmra.mxu0 %vm127_vm0, %v991_v61 }
 0x961   : > { %v2430_v2 = vpop.f32.mrf.mxu0 }
 0x963   : > { %v2432_v3 = vpop.f32.mrf.mxu0 }
 0x969   : > { %v2108_v4 = vpop.f32.mrf.mxu0 }
 0x96a   : > { %v1082_v5 = vsel %vm211_vm1, %v2108_v4, -inf }
 0x96b   : > { %1083 = vmax.xlane.f32.xlu0 %v1082_v5  ;;  %v1070_v6 = vpop.f32.mrf.mxu0 }
 0x96c   : > { %v1079_v7 = vsel %vm211_vm1, %v1070_v6, -inf }
 0x96d   : > { %1080 = vmax.xlane.f32.xlu1 %v1079_v7 }
 0x9f4   : > { %v1084_v8 = vpop.xlane.xlu0 %1083 }
 0x9f5   : > { %v1086_v9 = vsub.f32 %v2108_v4, %v1084_v8 }
 0x9f6   : > { %v1081_v10 = vpop.xlane.xlu1 %1080 }
 0x9f7   : > { %v1089_v11 = vmul.f32 1.442695, %v1086_v9  ;;  %v1085_v12 = vsub.f32 %v1070_v6, %v1081_v10 }
 0x9f9   : > { %2213 = vpow2.f32 %v1089_v11  ;;  %v1087_v13 = vmul.f32 1.442695, %v1085_v12 }
 0x9fb   : > { %2215 = vpow2.f32 %v1087_v13 }
 0xa06   : > { %v2214_v14 = vpop.eup %2213 }
 0xa07   : > { %v1094_v15 = vsel %vm211_vm1, %v2214_v14, 0.0 }
 0xa08   : > { %v2216_v16 = vpop.eup %2215  ;;  %1095 = vadd.xlane.f32.xlu1 %v1094_v15 }
 0xa09   : > { %v1091_v17 = vsel %vm211_vm1, %v2216_v16, 0.0 }
 0xa0a   : > { %1092 = vadd.xlane.f32.xlu0 %v1091_v17 }
 0xa19   : > { %1105 = vrot.lane.b32.xlu1 %v2322_v19, %s2261_s24 }
 0xa1d   : > { %1215 = vrot.lane.b32.xlu1 %v2295_v0, %s2262_s25 }
 0xa20   : > { %1107 = vrot.lane.b32.xlu0 %v2317_v18, %s2261_s24 }
 0xa21   : > { %1209 = vrot.lane.b32.xlu1 %v2298_v1, %s2263_s26 }
 0xa24   : > { %1213 = vrot.lane.b32.xlu0 %v2298_v1, %s2262_s25 }
 0xa28   : > { %1211 = vrot.lane.b32.xlu0 %v2295_v0, %s2263_s26 }
 0xa91   : > { %v1096_v20 = vpop.xlane.xlu1 %1095 }
 0xa92   : > { %2217 = vrcp.f32 %v1096_v20 }
 0xa93   : > { %v1093_v21 = vpop.xlane.xlu0 %1092 }
 0xa94   : > { %2219 = vrcp.f32 %v1093_v21 }
 0xa95   : > { %v1106_v22 = vpop.permute.xlu1 %1105 }
 0xa97   : > { %v1108_v23 = vpop.permute.xlu0 %1107 }
 0xa98   : > { %2109 = vmatprep.subr.mxu1 %v1108_v23 }
 0xa99   : > { %2110 = vmatpush3.msra.mxu1 %v1108_v23  ;;  %v1216_v24 = vpop.permute.xlu1 %1215 }
 0xa9a   : > { %2111 = vmatprep.subr.mxu1 %v1106_v22 }
 0xa9b   : > { %2112 = vmatpush3.msra.mxu1 %v1106_v22  ;;  %v1214_v34 = vpop.permute.xlu0 %1213 }
 0xa9c   : > { %2116 = vmatprep.subr.msk.mxu1 %vm127_vm0, %v1216_v24 }
 0xa9d   : > { %v1210_v31 = vpop.permute.xlu1 %1209 }
 0xa9f   : > { %v2218_v25 = vpop.eup %2217  ;;  %v1212_v35 = vpop.permute.xlu0 %1211 }
 0xaa0   : > { %v1100_v27 = vmul.f32 0.125, %v2218_v25 }
 0xaa1   : > { %v2220_v26 = vpop.eup %2219 }
 0xaa2   : > { %v1099_v28 = vmul.f32 0.125, %v2220_v26  ;;  %v1102_v30 = vmul.f32 %v2214_v14, %v1100_v27 }
 0xaa4   : > { %v1101_v29 = vmul.f32 %v2216_v16, %v1099_v28 }
 0xaa6   : > { %2113 = vmatprep.mubr.msk.f32.mxu1 %vm211_vm1, %v1101_v29 }
 0xaa7   : > { %2114 = vmatmul.mubr.msk.f32.vlgmr.msra.gmra.mxu1 %vm211_vm1, %v1102_v30 }
 0xaa8   : > { %2117 = vmatpush3.xpose.msk.msra.mxu1 %vm127_vm0, %v1216_v24  ;;  %2120 = vmatprep.mubr.msk.f32.mxu1 %vm127_vm0, %v1210_v31 }
 0xaa9   : > { %2118 = vmatprep.subr.msk.mxu1 %vm127_vm0, %v1214_v34 }
 0xaac   : > { %2119 = vmatpush3.xpose.msk.msra.mxu1 %vm127_vm0, %v1214_v34 }
 0xaaf   : > { %2121 = vmatmul.mubr.msk.f32.vlgmr.msra.gmra.mxu1 %vm127_vm0, %v1212_v35 }
 0xb67   : > { %v2458_v36 = vpop.f32.mrf.mxu1 }
 0xb69   : > { %v2460_v37 = vpop.f32.mrf.mxu1 }
 0xb6f   : > { %v2122_v38 = vpop.f32.mrf.mxu1 }
 0xb70   : > { %v1303_v39 = vsel %vm211_vm1, %v2122_v38, -inf }
 0xb71   : > { %1304 = vmax.xlane.f32.xlu0 %v1303_v39  ;;  %v1291_v40 = vpop.f32.mrf.mxu1 }
 0xb72   : > { %v1300_v41 = vsel %vm211_vm1, %v1291_v40, -inf }
 0xb73   : > { %1301 = vmax.xlane.f32.xlu1 %v1300_v41 }
 0xbfa   : > { %v1305_v42 = vpop.xlane.xlu0 %1304 }
 0xbfb   : > { %v1307_v43 = vsub.f32 %v2122_v38, %v1305_v42 }
 0xbfc   : > { %v1302_v44 = vpop.xlane.xlu1 %1301 }
 0xbfd   : > { %v1310_v45 = vmul.f32 1.442695, %v1307_v43  ;;  %v1306_v46 = vsub.f32 %v1291_v40, %v1302_v44 }
 0xbff   : > { %2221 = vpow2.f32 %v1310_v45  ;;  %v1308_v47 = vmul.f32 1.442695, %v1306_v46 }
 0xc01   : > { %2223 = vpow2.f32 %v1308_v47 }
 0xc0c   : > { %v2222_v48 = vpop.eup %2221 }
 0xc0d   : > { %v1315_v49 = vsel %vm211_vm1, %v2222_v48, 0.0 }
 0xc0e   : > { %v2224_v50 = vpop.eup %2223  ;;  %1316 = vadd.xlane.f32.xlu1 %v1315_v49 }
 0xc0f   : > { %v1312_v51 = vsel %vm211_vm1, %v2224_v50, 0.0 }
 0xc10   : > { %1313 = vadd.xlane.f32.xlu0 %v1312_v51 }
 0xc1f   : > { %1326 = vrot.lane.b32.xlu1 %v2322_v19, %s2263_s26 }
 0xc23   : > { %1436 = vrot.lane.b32.xlu1 %v2295_v0, %s2264_s27 }
 0xc26   : > { %1328 = vrot.lane.b32.xlu0 %v2317_v18, %s2263_s26 }
 0xc27   : > { %1430 = vrot.lane.b32.xlu1 %v2298_v1, %s2265_s28 }
 0xc2a   : > { %1434 = vrot.lane.b32.xlu0 %v2298_v1, %s2264_s27 }
 0xc2e   : > { %1432 = vrot.lane.b32.xlu0 %v2295_v0, %s2265_s28 }
 0xc97   : > { %v1317_v52 = vpop.xlane.xlu1 %1316 }
 0xc98   : > { %2225 = vrcp.f32 %v1317_v52 }
 0xc99   : > { %v1314_v53 = vpop.xlane.xlu0 %1313 }
 0xc9a   : > { %2227 = vrcp.f32 %v1314_v53 }
 0xc9b   : > { %v1327_v54 = vpop.permute.xlu1 %1326 }
 0xc9d   : > { %v1329_v55 = vpop.permute.xlu0 %1328 }
 0xc9e   : > { %2123 = vmatprep.subr.mxu0 %v1329_v55 }
 0xc9f   : > { %2124 = vmatpush3.msra.mxu0 %v1329_v55  ;;  %v1437_v56 = vpop.permute.xlu1 %1436 }
 0xca0   : > { %2125 = vmatprep.subr.mxu0 %v1327_v54 }
 0xca1   : > { %2126 = vmatpush3.msra.mxu0 %v1327_v54  ;;  %v1435_v6 = vpop.permute.xlu0 %1434 }
 0xca2   : > { %2130 = vmatprep.subr.msk.mxu0 %vm127_vm0, %v1437_v56 }
 0xca3   : > { %v1431_v5 = vpop.permute.xlu1 %1430 }
 0xca5   : > { %v2226_v57 = vpop.eup %2225  ;;  %v1433_v7 = vpop.permute.xlu0 %1432 }
 0xca6   : > { %v1321_v59 = vmul.f32 0.125, %v2226_v57 }
 0xca7   : > { %v2228_v58 = vpop.eup %2227 }
 0xca8   : > { %v1320_v60 = vmul.f32 0.125, %v2228_v58  ;;  %v1323_v4 = vmul.f32 %v2222_v48, %v1321_v59 }
 0xcaa   : > { %v1322_v61 = vmul.f32 %v2224_v50, %v1320_v60 }
 0xcac   : > { %2127 = vmatprep.mubr.msk.f32.mxu0 %vm211_vm1, %v1322_v61 }
 0xcad   : > { %2128 = vmatmul.mubr.msk.f32.vlgmr.msra.gmra.mxu0 %vm211_vm1, %v1323_v4 }
 0xcae   : > { %2131 = vmatpush3.xpose.msk.msra.mxu0 %vm127_vm0, %v1437_v56  ;;  %2134 = vmatprep.mubr.msk.f32.mxu0 %vm127_vm0, %v1431_v5 }
 0xcaf   : > { %2132 = vmatprep.subr.msk.mxu0 %vm127_vm0, %v1435_v6 }
 0xcb2   : > { %2133 = vmatpush3.xpose.msk.msra.mxu0 %vm127_vm0, %v1435_v6 }
 0xcb5   : > { %2135 = vmatmul.mubr.msk.f32.vlgmr.msra.gmra.mxu0 %vm127_vm0, %v1433_v7 }
 0xd6d   : > { %v2486_v8 = vpop.f32.mrf.mxu0 }
 0xd6f   : > { %v2488_v9 = vpop.f32.mrf.mxu0 }
 0xd75   : > { %v2136_v10 = vpop.f32.mrf.mxu0 }
 0xd76   : > { %v1524_v11 = vsel %vm211_vm1, %v2136_v10, -inf }
 0xd77   : > { %1525 = vmax.xlane.f32.xlu0 %v1524_v11  ;;  %v1512_v12 = vpop.f32.mrf.mxu0 }
 0xd78   : > { %v1521_v13 = vsel %vm211_vm1, %v1512_v12, -inf }
 0xd79   : > { %1522 = vmax.xlane.f32.xlu1 %v1521_v13 }
 0xe00   : > { %v1526_v14 = vpop.xlane.xlu0 %1525 }
 0xe01   : > { %v1528_v15 = vsub.f32 %v2136_v10, %v1526_v14 }
 0xe02   : > { %v1523_v16 = vpop.xlane.xlu1 %1522 }
 0xe03   : > { %v1531_v17 = vmul.f32 1.442695, %v1528_v15  ;;  %v1527_v20 = vsub.f32 %v1512_v12, %v1523_v16 }
 0xe05   : > { %2229 = vpow2.f32 %v1531_v17  ;;  %v1529_v21 = vmul.f32 1.442695, %v1527_v20 }
 0xe07   : > { %2231 = vpow2.f32 %v1529_v21 }
 0xe12   : > { %v2230_v22 = vpop.eup %2229 }
 0xe13   : > { %v1536_v23 = vsel %vm211_vm1, %v2230_v22, 0.0 }
 0xe14   : > { %v2232_v24 = vpop.eup %2231  ;;  %1537 = vadd.xlane.f32.xlu1 %v1536_v23 }
 0xe15   : > { %v1533_v25 = vsel %vm211_vm1, %v2232_v24, 0.0 }
 0xe16   : > { %1534 = vadd.xlane.f32.xlu0 %v1533_v25 }
 0xe25   : > { %1547 = vrot.lane.b32.xlu1 %v2322_v19, %s2265_s28 }
 0xe29   : > { %1657 = vrot.lane.b32.xlu1 %v2295_v0, %s2266_s29 }
 0xe2c   : > { %1549 = vrot.lane.b32.xlu0 %v2317_v18, %s2265_s28 }
 0xe2d   : > { %1651 = vrot.lane.b32.xlu1 %v2298_v1, %s2267_s30 }
 0xe30   : > { %1655 = vrot.lane.b32.xlu0 %v2298_v1, %s2266_s29 }
 0xe34   : > { %1653 = vrot.lane.b32.xlu0 %v2295_v0, %s2267_s30 }
 0xe9d   : > { %v1538_v26 = vpop.xlane.xlu1 %1537 }
 0xe9e   : > { %2233 = vrcp.f32 %v1538_v26 }
 0xe9f   : > { %v1535_v27 = vpop.xlane.xlu0 %1534 }
 0xea0   : > { %2235 = vrcp.f32 %v1535_v27 }
 0xea1   : > { %v1548_v28 = vpop.permute.xlu1 %1547 }
 0xea3   : > { %v1550_v29 = vpop.permute.xlu0 %1549 }
 0xea4   : > { %2137 = vmatprep.subr.mxu1 %v1550_v29 }
 0xea5   : > { %2138 = vmatpush3.msra.mxu1 %v1550_v29  ;;  %v1658_v30 = vpop.permute.xlu1 %1657 }
 0xea6   : > { %2139 = vmatprep.subr.mxu1 %v1548_v28 }
 0xea7   : > { %2140 = vmatpush3.msra.mxu1 %v1548_v28  ;;  %v1656_v40 = vpop.permute.xlu0 %1655 }
 0xea8   : > { %2144 = vmatprep.subr.msk.mxu1 %vm127_vm0, %v1658_v30 }
 0xea9   : > { %v1652_v0 = vpop.permute.xlu1 %1651 }
 0xeab   : > { %v2234_v31 = vpop.eup %2233  ;;  %v1654_v41 = vpop.permute.xlu0 %1653 }
 0xeac   : > { %v1542_v35 = vmul.f32 0.125, %v2234_v31 }
 0xead   : > { %v2236_v34 = vpop.eup %2235 }
 0xeae   : > { %v1541_v1 = vmul.f32 0.125, %v2236_v34  ;;  %v1544_v39 = vmul.f32 %v2230_v22, %v1542_v35 }
 0xeb0   : > { %v1543_v38 = vmul.f32 %v2232_v24, %v1541_v1 }
 0xeb2   : > { %2141 = vmatprep.mubr.msk.f32.mxu1 %vm211_vm1, %v1543_v38 }
 0xeb3   : > { %2142 = vmatmul.mubr.msk.f32.vlgmr.msra.gmra.mxu1 %vm211_vm1, %v1544_v39 }
 0xeb4   : > { %2145 = vmatpush3.xpose.msk.msra.mxu1 %vm127_vm0, %v1658_v30  ;;  %2148 = vmatprep.mubr.msk.f32.mxu1 %vm127_vm0, %v1652_v0 }
 0xeb5   : > { %2146 = vmatprep.subr.msk.mxu1 %vm127_vm0, %v1656_v40 }
 0xeb8   : > { %2147 = vmatpush3.xpose.msk.msra.mxu1 %vm127_vm0, %v1656_v40 }
 0xebb   : > { %2149 = vmatmul.mubr.msk.f32.vlgmr.msra.gmra.mxu1 %vm127_vm0, %v1654_v41 }
 0xf73   : > { %v2143_v42 = vpop.f32.mrf.mxu1 }
 0xf75   : > { %v1625_v43 = vpop.f32.mrf.mxu1 }
 0xf7b   : > { %v2150_v44 = vpop.f32.mrf.mxu1 }
 0xf7c   : > { %v1745_v45 = vsel %vm211_vm1, %v2150_v44, -inf }
 0xf7d   : > { %1746 = vmax.xlane.f32.xlu0 %v1745_v45  ;;  %v1733_v46 = vpop.f32.mrf.mxu1 }
 0xf7e   : > { %v1742_v47 = vsel %vm211_vm1, %v1733_v46, -inf }
 0xf7f   : > { %1743 = vmax.xlane.f32.xlu1 %v1742_v47 }
0x1006   : > { %v1747_v48 = vpop.xlane.xlu0 %1746 }
0x1007   : > { %v1749_v49 = vsub.f32 %v2150_v44, %v1747_v48 }
0x1008   : > { %v1744_v50 = vpop.xlane.xlu1 %1743 }
0x1009   : > { %v1752_v51 = vmul.f32 1.442695, %v1749_v49  ;;  %v1748_v52 = vsub.f32 %v1733_v46, %v1744_v50 }
0x100b   : > { %2237 = vpow2.f32 %v1752_v51  ;;  %v1750_v53 = vmul.f32 1.442695, %v1748_v52 }
0x100d   : > { %2239 = vpow2.f32 %v1750_v53 }
0x1018   : > { %v2238_v54 = vpop.eup %2237 }
0x1019   : > { %v1757_v55 = vsel %vm211_vm1, %v2238_v54, 0.0 }
0x101a   : > { %v2240_v56 = vpop.eup %2239  ;;  %1758 = vadd.xlane.f32.xlu1 %v1757_v55 }
0x101b   : > { %v1754_v57 = vsel %vm211_vm1, %v2240_v56, 0.0 }
0x101c   : > { %1755 = vadd.xlane.f32.xlu0 %v1754_v57 }
0x102b   : > { %1768 = vrot.lane.b32.xlu1 %v2322_v19, %s2267_s30 }
0x102f   : > { %531 = vrot.lane.b32.xlu1 %v2376_v63, %s2266_s29 }
0x1032   : > { %1770 = vrot.lane.b32.xlu0 %v2317_v18, %s2267_s30 }
0x1033   : > { %752 = vrot.lane.b32.xlu1 %v2404_v33, %s2264_s27 }
0x1036   : > { %533 = vrot.lane.b32.xlu0 %v2374_v62, %s2266_s29 }
0x1037   : > { %973 = vrot.lane.b32.xlu1 %v2432_v3, %s2262_s25 }
0x103a   : > { %754 = vrot.lane.b32.xlu0 %v2402_v32, %s2264_s27 }
0x103b   : > { %1194 = vrot.lane.b32.xlu1 %v2460_v37, %s2260_s23 }
0x103e   : > { %975 = vrot.lane.b32.xlu0 %v2430_v2, %s2262_s25 }
0x103f   : > { %1415 = vrot.lane.b32.xlu1 %v2488_v9, %s2258_s21 }
0x1042   : > { %1196 = vrot.lane.b32.xlu0 %v2458_v36, %s2260_s23 }
0x1043   : > { %1636 = vrot.lane.b32.xlu1 %v1625_v43, %s2256_s19 }
0x1046   : > { %1417 = vrot.lane.b32.xlu0 %v2486_v8, %s2258_s21 }
0x104a   : > { %1638 = vrot.lane.b32.xlu0 %v2143_v42, %s2256_s19 }
0x10a3   : > { %v1759_v18 = vpop.xlane.xlu1 %1758 }
0x10a4   : > { %2241 = vrcp.f32 %v1759_v18 }
0x10a5   : > { %v1756_v19 = vpop.xlane.xlu0 %1755 }
0x10a6   : > { %2243 = vrcp.f32 %v1756_v19 }
0x10a7   : > { %v1769_v62 = vpop.permute.xlu1 %1768 }
0x10a9   : > { %v1771_v63 = vpop.permute.xlu0 %1770 }
0x10aa   : > { %2151 = vmatprep.subr.mxu0 %v1771_v63 }
0x10ab   : > { %v532_v32 = vpop.permute.xlu1 %531  ;;  %2152 = vmatpush3.msra.mxu0 %v1771_v63 }
0x10ac   : > { %538 = vst.msk [vmem:[%s2344_s18] sm:$0xff] %vm537_vm2, %v532_v32  ;;  %2153 = vmatprep.subr.mxu0 %v1769_v62 }
0x10ad   : > { %v534_v33 = vpop.permute.xlu0 %533  ;;  %2154 = vmatpush3.msra.mxu0 %v1769_v62 }
0x10ae   : > { %539 = vst.msk [vmem:[%s2344_s18 + $0x8] sm:$0xff] %vm537_vm2, %v534_v33 }
0x10af   : > { %v753_v2 = vpop.permute.xlu1 %752 }
0x10b0   : > { %759 = vst.msk [vmem:[%s2344_s18] sm:$0xff] %vm758_vm3, %v753_v2 }
0x10b1   : > { %v2242_v3 = vpop.eup %2241  ;;  %v755_v36 = vpop.permute.xlu0 %754 }
0x10b2   : > { %760 = vst.msk [vmem:[%s2344_s18 + $0x8] sm:$0xff] %vm758_vm3, %v755_v36  ;;  %v1763_v58 = vmul.f32 0.125, %v2242_v3 }
0x10b3   : > { %v2244_v37 = vpop.eup %2243  ;;  %v974_v59 = vpop.permute.xlu1 %973 }
0x10b4   : > { %v1762_v60 = vmul.f32 0.125, %v2244_v37  ;;  %980 = vst.msk [vmem:[%s2344_s18] sm:$0xff] %vm979_vm4, %v974_v59  ;;  %v1765_v5 = vmul.f32 %v2238_v54, %v1763_v58 }
0x10b5   : > { %v976_v61 = vpop.permute.xlu0 %975 }
0x10b6   : > { %v1764_v4 = vmul.f32 %v2240_v56, %v1762_v60  ;;  %981 = vst.msk [vmem:[%s2344_s18 + $0x8] sm:$0xff] %vm979_vm4, %v976_v61 }
0x10b7   : > { %v1195_v6 = vpop.permute.xlu1 %1194 }
0x10b8   : > { %1201 = vst.msk [vmem:[%s2344_s18] sm:$0xff] %vm1200_vm5, %v1195_v6  ;;  %2155 = vmatprep.mubr.msk.f32.mxu0 %vm211_vm1, %v1764_v4 }
0x10b9   : > { %v1197_v7 = vpop.permute.xlu0 %1196  ;;  %2156 = vmatmul.mubr.msk.f32.vlgmr.msra.gmra.mxu0 %vm211_vm1, %v1765_v5 }
0x10ba   : > { %1202 = vst.msk [vmem:[%s2344_s18 + $0x8] sm:$0xff] %vm1200_vm5, %v1197_v7 }
0x10bb   : > { %v1416_v8 = vpop.permute.xlu1 %1415 }
0x10bc   : > { %1422 = vst.msk [vmem:[%s2344_s18] sm:$0xff] %vm1421_vm6, %v1416_v8 }
0x10bd   : > { %v1418_v9 = vpop.permute.xlu0 %1417 }
0x10be   : > { %1423 = vst.msk [vmem:[%s2344_s18 + $0x8] sm:$0xff] %vm1421_vm6, %v1418_v9 }
0x10bf   : > { %v1637_v10 = vpop.permute.xlu1 %1636 }
0x10c0   : > { %1643 = vst.msk [vmem:[%s2344_s18] sm:$0xff] %vm1642_vm7, %v1637_v10 }
0x10c1   : > { %v1639_v11 = vpop.permute.xlu0 %1638 }
0x10c2   : > { %1644 = vst.msk [vmem:[%s2344_s18 + $0x8] sm:$0xff] %vm1642_vm7, %v1639_v11 }
0x1179   : > { %v2157_v12 = vpop.f32.mrf.mxu0 }
0x117a   : > { %1859 = vrot.lane.b32.xlu0 %v2157_v12, %s2254_s13 }
0x117b   : > { %v1846_v13 = vpop.f32.mrf.mxu0 }
0x117c   : > { %1857 = vrot.lane.b32.xlu1 %v1846_v13, %s2254_s13 }
0x11ec   : > { %v1860_v14 = vpop.permute.xlu0 %1859 }
0x11ed   : > { %1865 = vst.msk [vmem:[%s2344_s18 + $0x8] sm:$0xff] %vm1863_vm8, %v1860_v14 }
0x11ee   : > { %v1858_v15 = vpop.permute.xlu1 %1857 }
0x11ef   : > { %1864 = vst.msk [vmem:[%s2344_s18] sm:$0xff] %vm1863_vm8, %v1858_v15 }
0x11f0 PF: > { %s11_s6 = sadd.s32 1, %s2251_s6  }
0x11f1   : > { %p8_p4 = scmp.ge.s32.totalorder %s11_s6, 4  }
0x11f3   :  { %10 = sbr.rel (!%p8_p4) target bundleno = 1 (0x1), region = 54 }

</bundles_post_ra>
